<compile_context>
chip_gen: v5e
topology: v5e:2x2
jax: 0.10.0
libtpu: 0.0.40
codegen_flags: <defaults>
</compile_context>

<pallas_src>
import functools

import jax
import jax.numpy as jnp
from jax.experimental import pallas as pl
from jax.experimental.pallas import tpu as pltpu


def _yolo_decode_kernel(anchors_ref, x_ref, out_ref, *, nA, num_attrs, a_pad,
                        stride, gs):
    """Decode the nA anchor slabs of one batch element.

    anchors_ref : SMEM f32[2*nA]          raw (anchor_w, anchor_h) pairs
    x_ref       : VMEM f32[nA, A, gs*gs]  channel-major raw conv outputs
    out_ref     : VMEM f32[nA, gs*gs, A]  decoded predictions (final layout)
    """
    P = gs * gs
    s = jnp.float32(stride)
    gsf = jnp.float32(gs)

    # Flattened cell index p = j*gs + i lives on the lane axis.
    flat = jax.lax.broadcasted_iota(jnp.int32, (1, P), 1).astype(jnp.float32)
    gy = jnp.floor((flat + 0.5) / gsf)   # row j; +0.5 margin keeps floor exact
    gx = flat - gy * gsf                 # col i

    n_pad = a_pad - num_attrs

    for n in range(nA):  # static unroll; block is anchor-aligned (NB == nA)
        # All of these are (1, P) / (C, P): lane-dense VPU/EUP work.
        bx = (jax.nn.sigmoid(x_ref[n, 0:1, :]) + gx) * s
        by = (jax.nn.sigmoid(x_ref[n, 1:2, :]) + gy) * s
        bw = jnp.exp(x_ref[n, 2:3, :]) * anchors_ref[2 * n]        # raw anchor_w
        bh = jnp.exp(x_ref[n, 3:4, :]) * anchors_ref[2 * n + 1]    # raw anchor_h
        conf = jax.nn.sigmoid(x_ref[n, 4:5, :])

        # Class softmax over the (small) sublane attribute axis.
        logits = x_ref[n, 5:num_attrs, :]                          # (C, P)
        m = jnp.max(logits, axis=0, keepdims=True)
        e = jnp.exp(logits - m)
        inv = pl.reciprocal(jnp.sum(e, axis=0, keepdims=True), approx=True)
        cls = e * inv

        parts = [bx, by, bw, bh, conf, cls]
        if n_pad:
            parts.append(jnp.zeros((n_pad, P), jnp.float32))
        full = jnp.concatenate(parts, axis=0)                      # (a_pad, P)

        # Single relayout per slab: channel-major -> (cell, attr) output order.
        out_ref[n] = jnp.transpose(full)[:, :num_attrs]            # (P, A) store


def yolo_layer_forward(x, anchors, num_classes, reso):
    """Eval-mode YOLOLayer.forward.  x: f32[bs, nA*(5+num_classes), gs, gs]."""
    bs, ch, gs, gs2 = x.shape
    assert gs == gs2
    nA = len(anchors)
    num_attrs = 5 + num_classes
    assert ch == nA * num_attrs
    stride = reso // gs
    P = gs * gs
    a_pad = ((num_attrs + 7) // 8) * 8     # pad attr axis to sublane multiple

    # (anchor/stride) * stride == anchor, so pass the raw anchors, flat 1-D.
    anchors_flat = jnp.asarray(anchors, dtype=jnp.float32).reshape(-1)  # (2*nA,)

    # Channel-major, lane-dense view: a FREE reshape of the NCHW conv output.
    x_cm = x.reshape(bs * nA, num_attrs, P).astype(jnp.float32)

    kernel = functools.partial(
        _yolo_decode_kernel, nA=nA, num_attrs=num_attrs, a_pad=a_pad,
        stride=float(stride), gs=gs)

    out = pl.pallas_call(
        kernel,
        out_shape=jax.ShapeDtypeStruct((bs * nA, P, num_attrs), jnp.float32),
        grid_spec=pltpu.PrefetchScalarGridSpec(
            num_scalar_prefetch=0,
            grid=(bs,),  # one step per batch element; nA slabs per step
            in_specs=[
                pl.BlockSpec(memory_space=pltpu.MemorySpace.SMEM),   # anchors
                pl.BlockSpec((nA, num_attrs, P), lambda b: (b, 0, 0)),
            ],
            out_specs=pl.BlockSpec((nA, P, num_attrs), lambda b: (b, 0, 0)),
        ),
        compiler_params=pltpu.CompilerParams(
            dimension_semantics=("parallel",)),
    )(anchors_flat, x_cm)

    # pred.view(bs, -1, num_attrs): (anchor, row, col) flattening order — free reshape.
    return out.reshape(bs, nA * P, num_attrs)


def _reference(x, anchors, num_classes, reso):
    """Pure-JAX reference of the PyTorch eval-mode forward."""
    bs, _, gs, _ = x.shape
    nA = len(anchors)
    A = 5 + num_classes
    stride = reso // gs
    sa = jnp.asarray([(w / stride, h / stride) for w, h in anchors], jnp.float32)
    xr = x.reshape(bs, nA, A, gs, gs).transpose(0, 1, 3, 4, 2)
    tx = jax.nn.sigmoid(xr[..., 0])
    ty = jax.nn.sigmoid(xr[..., 1])
    tw = xr[..., 2]
    th = xr[..., 3]
    conf = jax.nn.sigmoid(xr[..., 4])
    cls = jax.nn.softmax(xr[..., 5:], axis=-1)
    gx = jnp.arange(gs, dtype=jnp.float32).reshape(1, 1, 1, gs)
    gy = jnp.arange(gs, dtype=jnp.float32).reshape(1, 1, gs, 1)
    aw = sa[:, 0].reshape(1, nA, 1, 1)
    ah = sa[:, 1].reshape(1, nA, 1, 1)
    s = float(stride)
    pred = jnp.concatenate(
        [
            ((tx + gx) * s)[..., None],
            ((ty + gy) * s)[..., None],
            (jnp.exp(tw) * aw * s)[..., None],
            (jnp.exp(th) * ah * s)[..., None],
            conf[..., None],
            cls,
        ],
        axis=-1,
    )
    return pred.reshape(bs, -1, A)


if __name__ == "__main__":
    # Deterministic synthetic config (no checkpoint): 3 anchors, 8 classes,
    # reso=64, gs=16 -> stride=4; x is the raw detection-head conv output.
    anchors = [(10.0, 14.0), (23.0, 27.0), (37.0, 58.0)]
    num_classes = 8
    reso = 64
    bs, gs = 2, 16
    nA = len(anchors)
    num_attrs = 5 + num_classes

    key = jax.random.PRNGKey(0)
    x = jax.random.normal(key, (bs, nA * num_attrs, gs, gs), dtype=jnp.float32)

    out = yolo_layer_forward(x, anchors, num_classes, reso)
    out = jax.block_until_ready(out)

    ref = _reference(x, anchors, num_classes, reso)
    assert out.shape == (bs, nA * gs * gs, num_attrs), out.shape
    # approx=True reciprocal in the class softmax -> relaxed tolerance.
    max_err = float(jnp.max(jnp.abs(out - ref)))
    assert jnp.allclose(out, ref, rtol=5e-3, atol=5e-3), max_err
    print("KERNEL_OK")
</pallas_src>

<mosaic_0001>
module attributes {stable_mosaic.version = 11 : i64} {
  func.func @_yolo_decode_kernel(%arg0: i32, %arg1: memref<6xf32, #tpu.memory_space<smem>>, %arg2: memref<3x13x256xf32, #tpu.memory_space<vmem>>, %arg3: memref<3x256x13xf32, #tpu.memory_space<vmem>>) attributes {dimension_semantics = [#tpu.dimension_semantics<parallel>], iteration_bounds = array<i64: 2>, scalar_prefetch = 0 : i64, scratch_operands = 0 : i64, tpu.core_type = #tpu.core_type<tc>, window_params = [{transform_indices = @transform_0, window_bounds = array<i64: 6>}, {transform_indices = @transform_1, window_bounds = array<i64: 3, 13, 256>}, {transform_indices = @transform_2, window_bounds = array<i64: 3, 256, 13>}]} {
    %0 = tpu.iota {dimensions = array<i32: 1>} : vector<1x256xi32>
    %1 = arith.sitofp %0 : vector<1x256xi32> to vector<1x256xf32>
    %cst = arith.constant 5.000000e-01 : f32
    %2 = vector.broadcast %cst : f32 to vector<1x256xf32>
    %3 = arith.addf %1, %2 : vector<1x256xf32>
    %cst_0 = arith.constant 1.600000e+01 : f32
    %4 = vector.broadcast %cst_0 : f32 to vector<1x256xf32>
    %5 = arith.divf %3, %4 : vector<1x256xf32>
    %6 = math.floor %5 : vector<1x256xf32>
    %cst_1 = arith.constant 1.600000e+01 : f32
    %7 = vector.broadcast %cst_1 : f32 to vector<1x256xf32>
    %8 = arith.mulf %6, %7 : vector<1x256xf32>
    %9 = arith.subf %1, %8 : vector<1x256xf32>
    %c0 = arith.constant 0 : index
    %c0_2 = arith.constant 0 : index
    %c0_3 = arith.constant 0 : index
    %10 = vector.load %arg2[%c0, %c0_2, %c0_3] : memref<3x13x256xf32, #tpu.memory_space<vmem>>, vector<1x1x256xf32>
    %11 = vector.shape_cast %10 : vector<1x1x256xf32> to vector<1x256xf32>
    %12 = arith.negf %11 : vector<1x256xf32>
    %13 = math.exp %12 : vector<1x256xf32>
    %cst_4 = arith.constant 1.000000e+00 : f32
    %14 = vector.broadcast %cst_4 : f32 to vector<1x256xf32>
    %15 = arith.addf %14, %13 : vector<1x256xf32>
    %16 = arith.divf %14, %15 : vector<1x256xf32>
    %17 = arith.addf %16, %9 : vector<1x256xf32>
    %cst_5 = arith.constant 4.000000e+00 : f32
    %18 = vector.broadcast %cst_5 : f32 to vector<1x256xf32>
    %19 = arith.mulf %17, %18 : vector<1x256xf32>
    %c0_6 = arith.constant 0 : index
    %c1 = arith.constant 1 : index
    %c0_7 = arith.constant 0 : index
    %20 = vector.load %arg2[%c0_6, %c1, %c0_7] : memref<3x13x256xf32, #tpu.memory_space<vmem>>, vector<1x1x256xf32>
    %21 = vector.shape_cast %20 : vector<1x1x256xf32> to vector<1x256xf32>
    %22 = arith.negf %21 : vector<1x256xf32>
    %23 = math.exp %22 : vector<1x256xf32>
    %cst_8 = arith.constant 1.000000e+00 : f32
    %24 = vector.broadcast %cst_8 : f32 to vector<1x256xf32>
    %25 = arith.addf %24, %23 : vector<1x256xf32>
    %26 = arith.divf %24, %25 : vector<1x256xf32>
    %27 = arith.addf %26, %6 : vector<1x256xf32>
    %cst_9 = arith.constant 4.000000e+00 : f32
    %28 = vector.broadcast %cst_9 : f32 to vector<1x256xf32>
    %29 = arith.mulf %27, %28 : vector<1x256xf32>
    %c0_10 = arith.constant 0 : index
    %c2 = arith.constant 2 : index
    %c0_11 = arith.constant 0 : index
    %30 = vector.load %arg2[%c0_10, %c2, %c0_11] : memref<3x13x256xf32, #tpu.memory_space<vmem>>, vector<1x1x256xf32>
    %31 = vector.shape_cast %30 : vector<1x1x256xf32> to vector<1x256xf32>
    %32 = math.exp %31 : vector<1x256xf32>
    %c0_12 = arith.constant 0 : index
    %33 = memref.load %arg1[%c0_12] : memref<6xf32, #tpu.memory_space<smem>>
    %34 = vector.broadcast %33 : f32 to vector<1x256xf32>
    %35 = arith.mulf %32, %34 : vector<1x256xf32>
    %c0_13 = arith.constant 0 : index
    %c3 = arith.constant 3 : index
    %c0_14 = arith.constant 0 : index
    %36 = vector.load %arg2[%c0_13, %c3, %c0_14] : memref<3x13x256xf32, #tpu.memory_space<vmem>>, vector<1x1x256xf32>
    %37 = vector.shape_cast %36 : vector<1x1x256xf32> to vector<1x256xf32>
    %38 = math.exp %37 : vector<1x256xf32>
    %c1_15 = arith.constant 1 : index
    %39 = memref.load %arg1[%c1_15] : memref<6xf32, #tpu.memory_space<smem>>
    %40 = vector.broadcast %39 : f32 to vector<1x256xf32>
    %41 = arith.mulf %38, %40 : vector<1x256xf32>
    %c0_16 = arith.constant 0 : index
    %c4 = arith.constant 4 : index
    %c0_17 = arith.constant 0 : index
    %42 = vector.load %arg2[%c0_16, %c4, %c0_17] : memref<3x13x256xf32, #tpu.memory_space<vmem>>, vector<1x1x256xf32>
    %43 = vector.shape_cast %42 : vector<1x1x256xf32> to vector<1x256xf32>
    %44 = arith.negf %43 : vector<1x256xf32>
    %45 = math.exp %44 : vector<1x256xf32>
    %cst_18 = arith.constant 1.000000e+00 : f32
    %46 = vector.broadcast %cst_18 : f32 to vector<1x256xf32>
    %47 = arith.addf %46, %45 : vector<1x256xf32>
    %48 = arith.divf %46, %47 : vector<1x256xf32>
    %c0_19 = arith.constant 0 : index
    %c5 = arith.constant 5 : index
    %c0_20 = arith.constant 0 : index
    %49 = vector.load %arg2[%c0_19, %c5, %c0_20] : memref<3x13x256xf32, #tpu.memory_space<vmem>>, vector<1x8x256xf32>
    %50 = vector.shape_cast %49 : vector<1x8x256xf32> to vector<8x256xf32>
    %cst_21 = arith.constant dense<0xFF800000> : vector<256xf32>
    %51 = vector.multi_reduction <maximumf>, %50, %cst_21 [0] : vector<8x256xf32> to vector<256xf32>
    %52 = vector.shape_cast %51 : vector<256xf32> to vector<1x256xf32>
    %53 = vector.broadcast %52 : vector<1x256xf32> to vector<8x256xf32>
    %54 = arith.subf %50, %53 : vector<8x256xf32>
    %55 = math.exp %54 : vector<8x256xf32>
    %cst_22 = arith.constant dense<0.000000e+00> : vector<256xf32>
    %56 = vector.multi_reduction <add>, %55, %cst_22 [0] : vector<8x256xf32> to vector<256xf32>
    %57 = vector.shape_cast %56 : vector<256xf32> to vector<1x256xf32>
    %58 = tpu.reciprocal %57 {approx = true} : vector<1x256xf32> -> vector<1x256xf32>
    %59 = vector.broadcast %58 : vector<1x256xf32> to vector<8x256xf32>
    %60 = arith.mulf %55, %59 : vector<8x256xf32>
    %cst_23 = arith.constant 0.000000e+00 : f32
    %61 = vector.broadcast %cst_23 : f32 to vector<3x256xf32>
    %62 = tpu.concatenate %19, %29, %35, %41, %48, %60, %61 in 0 : vector<1x256xf32>, vector<1x256xf32>, vector<1x256xf32>, vector<1x256xf32>, vector<1x256xf32>, vector<8x256xf32>, vector<3x256xf32> -> vector<16x256xf32>
    %63 = tpu.transpose %62, [1, 0] : vector<16x256xf32> -> vector<256x16xf32>
    %64 = vector.extract_strided_slice %63 {offsets = [0, 0], sizes = [256, 13], strides = [1, 1]} : vector<256x16xf32> to vector<256x13xf32>
    %c0_24 = arith.constant 0 : index
    %c0_25 = arith.constant 0 : index
    %c0_26 = arith.constant 0 : index
    %65 = vector.load %arg3[%c0_24, %c0_25, %c0_26] : memref<3x256x13xf32, #tpu.memory_space<vmem>>, vector<1x256x13xf32>
    %66 = vector.shape_cast %65 : vector<1x256x13xf32> to vector<256x13xf32>
    %67 = vector.shape_cast %64 : vector<256x13xf32> to vector<1x256x13xf32>
    tpu.vector_store %arg3[%c0_24, %c0_25, %c0_26], %67 {strides = array<i32>} : memref<3x256x13xf32, #tpu.memory_space<vmem>>, vector<1x256x13xf32>,
    %c1_27 = arith.constant 1 : index
    %c0_28 = arith.constant 0 : index
    %c0_29 = arith.constant 0 : index
    %68 = vector.load %arg2[%c1_27, %c0_28, %c0_29] : memref<3x13x256xf32, #tpu.memory_space<vmem>>, vector<1x1x256xf32>
    %69 = vector.shape_cast %68 : vector<1x1x256xf32> to vector<1x256xf32>
    %70 = arith.negf %69 : vector<1x256xf32>
    %71 = math.exp %70 : vector<1x256xf32>
    %cst_30 = arith.constant 1.000000e+00 : f32
    %72 = vector.broadcast %cst_30 : f32 to vector<1x256xf32>
    %73 = arith.addf %72, %71 : vector<1x256xf32>
    %74 = arith.divf %72, %73 : vector<1x256xf32>
    %75 = arith.addf %74, %9 : vector<1x256xf32>
    %cst_31 = arith.constant 4.000000e+00 : f32
    %76 = vector.broadcast %cst_31 : f32 to vector<1x256xf32>
    %77 = arith.mulf %75, %76 : vector<1x256xf32>
    %c1_32 = arith.constant 1 : index
    %c1_33 = arith.constant 1 : index
    %c0_34 = arith.constant 0 : index
    %78 = vector.load %arg2[%c1_32, %c1_33, %c0_34] : memref<3x13x256xf32, #tpu.memory_space<vmem>>, vector<1x1x256xf32>
    %79 = vector.shape_cast %78 : vector<1x1x256xf32> to vector<1x256xf32>
    %80 = arith.negf %79 : vector<1x256xf32>
    %81 = math.exp %80 : vector<1x256xf32>
    %cst_35 = arith.constant 1.000000e+00 : f32
    %82 = vector.broadcast %cst_35 : f32 to vector<1x256xf32>
    %83 = arith.addf %82, %81 : vector<1x256xf32>
    %84 = arith.divf %82, %83 : vector<1x256xf32>
    %85 = arith.addf %84, %6 : vector<1x256xf32>
    %cst_36 = arith.constant 4.000000e+00 : f32
    %86 = vector.broadcast %cst_36 : f32 to vector<1x256xf32>
    %87 = arith.mulf %85, %86 : vector<1x256xf32>
    %c1_37 = arith.constant 1 : index
    %c2_38 = arith.constant 2 : index
    %c0_39 = arith.constant 0 : index
    %88 = vector.load %arg2[%c1_37, %c2_38, %c0_39] : memref<3x13x256xf32, #tpu.memory_space<vmem>>, vector<1x1x256xf32>
    %89 = vector.shape_cast %88 : vector<1x1x256xf32> to vector<1x256xf32>
    %90 = math.exp %89 : vector<1x256xf32>
    %c2_40 = arith.constant 2 : index
    %91 = memref.load %arg1[%c2_40] : memref<6xf32, #tpu.memory_space<smem>>
    %92 = vector.broadcast %91 : f32 to vector<1x256xf32>
    %93 = arith.mulf %90, %92 : vector<1x256xf32>
    %c1_41 = arith.constant 1 : index
    %c3_42 = arith.constant 3 : index
    %c0_43 = arith.constant 0 : index
    %94 = vector.load %arg2[%c1_41, %c3_42, %c0_43] : memref<3x13x256xf32, #tpu.memory_space<vmem>>, vector<1x1x256xf32>
    %95 = vector.shape_cast %94 : vector<1x1x256xf32> to vector<1x256xf32>
    %96 = math.exp %95 : vector<1x256xf32>
    %c3_44 = arith.constant 3 : index
    %97 = memref.load %arg1[%c3_44] : memref<6xf32, #tpu.memory_space<smem>>
    %98 = vector.broadcast %97 : f32 to vector<1x256xf32>
    %99 = arith.mulf %96, %98 : vector<1x256xf32>
    %c1_45 = arith.constant 1 : index
    %c4_46 = arith.constant 4 : index
    %c0_47 = arith.constant 0 : index
    %100 = vector.load %arg2[%c1_45, %c4_46, %c0_47] : memref<3x13x256xf32, #tpu.memory_space<vmem>>, vector<1x1x256xf32>
    %101 = vector.shape_cast %100 : vector<1x1x256xf32> to vector<1x256xf32>
    %102 = arith.negf %101 : vector<1x256xf32>
    %103 = math.exp %102 : vector<1x256xf32>
    %cst_48 = arith.constant 1.000000e+00 : f32
    %104 = vector.broadcast %cst_48 : f32 to vector<1x256xf32>
    %105 = arith.addf %104, %103 : vector<1x256xf32>
    %106 = arith.divf %104, %105 : vector<1x256xf32>
    %c1_49 = arith.constant 1 : index
    %c5_50 = arith.constant 5 : index
    %c0_51 = arith.constant 0 : index
    %107 = vector.load %arg2[%c1_49, %c5_50, %c0_51] : memref<3x13x256xf32, #tpu.memory_space<vmem>>, vector<1x8x256xf32>
    %108 = vector.shape_cast %107 : vector<1x8x256xf32> to vector<8x256xf32>
    %cst_52 = arith.constant dense<0xFF800000> : vector<256xf32>
    %109 = vector.multi_reduction <maximumf>, %108, %cst_52 [0] : vector<8x256xf32> to vector<256xf32>
    %110 = vector.shape_cast %109 : vector<256xf32> to vector<1x256xf32>
    %111 = vector.broadcast %110 : vector<1x256xf32> to vector<8x256xf32>
    %112 = arith.subf %108, %111 : vector<8x256xf32>
    %113 = math.exp %112 : vector<8x256xf32>
    %cst_53 = arith.constant dense<0.000000e+00> : vector<256xf32>
    %114 = vector.multi_reduction <add>, %113, %cst_53 [0] : vector<8x256xf32> to vector<256xf32>
    %115 = vector.shape_cast %114 : vector<256xf32> to vector<1x256xf32>
    %116 = tpu.reciprocal %115 {approx = true} : vector<1x256xf32> -> vector<1x256xf32>
    %117 = vector.broadcast %116 : vector<1x256xf32> to vector<8x256xf32>
    %118 = arith.mulf %113, %117 : vector<8x256xf32>
    %cst_54 = arith.constant 0.000000e+00 : f32
    %119 = vector.broadcast %cst_54 : f32 to vector<3x256xf32>
    %120 = tpu.concatenate %77, %87, %93, %99, %106, %118, %119 in 0 : vector<1x256xf32>, vector<1x256xf32>, vector<1x256xf32>, vector<1x256xf32>, vector<1x256xf32>, vector<8x256xf32>, vector<3x256xf32> -> vector<16x256xf32>
    %121 = tpu.transpose %120, [1, 0] : vector<16x256xf32> -> vector<256x16xf32>
    %122 = vector.extract_strided_slice %121 {offsets = [0, 0], sizes = [256, 13], strides = [1, 1]} : vector<256x16xf32> to vector<256x13xf32>
    %c1_55 = arith.constant 1 : index
    %c0_56 = arith.constant 0 : index
    %c0_57 = arith.constant 0 : index
    %123 = vector.load %arg3[%c1_55, %c0_56, %c0_57] : memref<3x256x13xf32, #tpu.memory_space<vmem>>, vector<1x256x13xf32>
    %124 = vector.shape_cast %123 : vector<1x256x13xf32> to vector<256x13xf32>
    %125 = vector.shape_cast %122 : vector<256x13xf32> to vector<1x256x13xf32>
    tpu.vector_store %arg3[%c1_55, %c0_56, %c0_57], %125 {strides = array<i32>} : memref<3x256x13xf32, #tpu.memory_space<vmem>>, vector<1x256x13xf32>,
    %c2_58 = arith.constant 2 : index
    %c0_59 = arith.constant 0 : index
    %c0_60 = arith.constant 0 : index
    %126 = vector.load %arg2[%c2_58, %c0_59, %c0_60] : memref<3x13x256xf32, #tpu.memory_space<vmem>>, vector<1x1x256xf32>
    %127 = vector.shape_cast %126 : vector<1x1x256xf32> to vector<1x256xf32>
    %128 = arith.negf %127 : vector<1x256xf32>
    %129 = math.exp %128 : vector<1x256xf32>
    %cst_61 = arith.constant 1.000000e+00 : f32
    %130 = vector.broadcast %cst_61 : f32 to vector<1x256xf32>
    %131 = arith.addf %130, %129 : vector<1x256xf32>
    %132 = arith.divf %130, %131 : vector<1x256xf32>
    %133 = arith.addf %132, %9 : vector<1x256xf32>
    %cst_62 = arith.constant 4.000000e+00 : f32
    %134 = vector.broadcast %cst_62 : f32 to vector<1x256xf32>
    %135 = arith.mulf %133, %134 : vector<1x256xf32>
    %c2_63 = arith.constant 2 : index
    %c1_64 = arith.constant 1 : index
    %c0_65 = arith.constant 0 : index
    %136 = vector.load %arg2[%c2_63, %c1_64, %c0_65] : memref<3x13x256xf32, #tpu.memory_space<vmem>>, vector<1x1x256xf32>
    %137 = vector.shape_cast %136 : vector<1x1x256xf32> to vector<1x256xf32>
    %138 = arith.negf %137 : vector<1x256xf32>
    %139 = math.exp %138 : vector<1x256xf32>
    %cst_66 = arith.constant 1.000000e+00 : f32
    %140 = vector.broadcast %cst_66 : f32 to vector<1x256xf32>
    %141 = arith.addf %140, %139 : vector<1x256xf32>
    %142 = arith.divf %140, %141 : vector<1x256xf32>
    %143 = arith.addf %142, %6 : vector<1x256xf32>
    %cst_67 = arith.constant 4.000000e+00 : f32
    %144 = vector.broadcast %cst_67 : f32 to vector<1x256xf32>
    %145 = arith.mulf %143, %144 : vector<1x256xf32>
    %c2_68 = arith.constant 2 : index
    %c2_69 = arith.constant 2 : index
    %c0_70 = arith.constant 0 : index
    %146 = vector.load %arg2[%c2_68, %c2_69, %c0_70] : memref<3x13x256xf32, #tpu.memory_space<vmem>>, vector<1x1x256xf32>
    %147 = vector.shape_cast %146 : vector<1x1x256xf32> to vector<1x256xf32>
    %148 = math.exp %147 : vector<1x256xf32>
    %c4_71 = arith.constant 4 : index
    %149 = memref.load %arg1[%c4_71] : memref<6xf32, #tpu.memory_space<smem>>
    %150 = vector.broadcast %149 : f32 to vector<1x256xf32>
    %151 = arith.mulf %148, %150 : vector<1x256xf32>
    %c2_72 = arith.constant 2 : index
    %c3_73 = arith.constant 3 : index
    %c0_74 = arith.constant 0 : index
    %152 = vector.load %arg2[%c2_72, %c3_73, %c0_74] : memref<3x13x256xf32, #tpu.memory_space<vmem>>, vector<1x1x256xf32>
    %153 = vector.shape_cast %152 : vector<1x1x256xf32> to vector<1x256xf32>
    %154 = math.exp %153 : vector<1x256xf32>
    %c5_75 = arith.constant 5 : index
    %155 = memref.load %arg1[%c5_75] : memref<6xf32, #tpu.memory_space<smem>>
    %156 = vector.broadcast %155 : f32 to vector<1x256xf32>
    %157 = arith.mulf %154, %156 : vector<1x256xf32>
    %c2_76 = arith.constant 2 : index
    %c4_77 = arith.constant 4 : index
    %c0_78 = arith.constant 0 : index
    %158 = vector.load %arg2[%c2_76, %c4_77, %c0_78] : memref<3x13x256xf32, #tpu.memory_space<vmem>>, vector<1x1x256xf32>
    %159 = vector.shape_cast %158 : vector<1x1x256xf32> to vector<1x256xf32>
    %160 = arith.negf %159 : vector<1x256xf32>
    %161 = math.exp %160 : vector<1x256xf32>
    %cst_79 = arith.constant 1.000000e+00 : f32
    %162 = vector.broadcast %cst_79 : f32 to vector<1x256xf32>
    %163 = arith.addf %162, %161 : vector<1x256xf32>
    %164 = arith.divf %162, %163 : vector<1x256xf32>
    %c2_80 = arith.constant 2 : index
    %c5_81 = arith.constant 5 : index
    %c0_82 = arith.constant 0 : index
    %165 = vector.load %arg2[%c2_80, %c5_81, %c0_82] : memref<3x13x256xf32, #tpu.memory_space<vmem>>, vector<1x8x256xf32>
    %166 = vector.shape_cast %165 : vector<1x8x256xf32> to vector<8x256xf32>
    %cst_83 = arith.constant dense<0xFF800000> : vector<256xf32>
    %167 = vector.multi_reduction <maximumf>, %166, %cst_83 [0] : vector<8x256xf32> to vector<256xf32>
    %168 = vector.shape_cast %167 : vector<256xf32> to vector<1x256xf32>
    %169 = vector.broadcast %168 : vector<1x256xf32> to vector<8x256xf32>
    %170 = arith.subf %166, %169 : vector<8x256xf32>
    %171 = math.exp %170 : vector<8x256xf32>
    %cst_84 = arith.constant dense<0.000000e+00> : vector<256xf32>
    %172 = vector.multi_reduction <add>, %171, %cst_84 [0] : vector<8x256xf32> to vector<256xf32>
    %173 = vector.shape_cast %172 : vector<256xf32> to vector<1x256xf32>
    %174 = tpu.reciprocal %173 {approx = true} : vector<1x256xf32> -> vector<1x256xf32>
    %175 = vector.broadcast %174 : vector<1x256xf32> to vector<8x256xf32>
    %176 = arith.mulf %171, %175 : vector<8x256xf32>
    %cst_85 = arith.constant 0.000000e+00 : f32
    %177 = vector.broadcast %cst_85 : f32 to vector<3x256xf32>
    %178 = tpu.concatenate %135, %145, %151, %157, %164, %176, %177 in 0 : vector<1x256xf32>, vector<1x256xf32>, vector<1x256xf32>, vector<1x256xf32>, vector<1x256xf32>, vector<8x256xf32>, vector<3x256xf32> -> vector<16x256xf32>
    %179 = tpu.transpose %178, [1, 0] : vector<16x256xf32> -> vector<256x16xf32>
    %180 = vector.extract_strided_slice %179 {offsets = [0, 0], sizes = [256, 13], strides = [1, 1]} : vector<256x16xf32> to vector<256x13xf32>
    %c2_86 = arith.constant 2 : index
    %c0_87 = arith.constant 0 : index
    %c0_88 = arith.constant 0 : index
    %181 = vector.load %arg3[%c2_86, %c0_87, %c0_88] : memref<3x256x13xf32, #tpu.memory_space<vmem>>, vector<1x256x13xf32>
    %182 = vector.shape_cast %181 : vector<1x256x13xf32> to vector<256x13xf32>
    %183 = vector.shape_cast %180 : vector<256x13xf32> to vector<1x256x13xf32>
    tpu.vector_store %arg3[%c2_86, %c0_87, %c0_88], %183 {strides = array<i32>} : memref<3x256x13xf32, #tpu.memory_space<vmem>>, vector<1x256x13xf32>,
    return
  }
  func.func @transform_0(%arg0: i32) -> i32 {
    %c0_i32 = arith.constant 0 : i32
    %c0_i32_0 = arith.constant 0 : i32
    return %c0_i32 : i32
  }
  func.func @transform_1(%arg0: i32) -> (i32, i32, i32) {
    %c0_i32 = arith.constant 0 : i32
    %c0_i32_0 = arith.constant 0 : i32
    %c0_i32_1 = arith.constant 0 : i32
    return %arg0, %c0_i32, %c0_i32_0 : i32, i32, i32
  }
  func.func @transform_2(%arg0: i32) -> (i32, i32, i32) {
    %c0_i32 = arith.constant 0 : i32
    %c0_i32_0 = arith.constant 0 : i32
    %c0_i32_1 = arith.constant 0 : i32
    return %arg0, %c0_i32, %c0_i32_0 : i32, i32, i32
  }
}

</mosaic_0001>

<bundles_post_ra>
// kernel: tpu_custom_call.1
= control target key start
LH: loop header
LB: loop body
LE: loop exit
PB: predicated region body
PF: predicated region fallthrough
CT: control target
= control target key end

     0   :  { %7 = vsyncpa [#allocation4], 0  ;;  %s2243_s0 = inlined_call_operand.hbm [shape: f32[6], index: 0, kind: input, shape index: {}]   ;;  %s2244_s1 = inlined_call_operand.hbm [shape: f32[6,13,256], index: 1, kind: input, shape index: {}]   ;;  %s2245_s2 = inlined_call_operand.vmem [shape: f32[6,256,13], index: 2, kind: output, shape index: {}]  }
   0x1   :  { %8 = vsyncpa [#allocation3], 0 }
   0x2   :  { %10 = vsyncpa [#allocation3 + $0x1], 0  ;;  %s1511_s9 = smov 0   ;;  %s1513_s10 = smov 0  }
   0x3   :  { %s1515_s11 = smov 0   ;;  %s1517_s12 = smov 0  }
   0x4 LB: > { %s1148_s13 = sadd.s32 4294967295, %s1490_s12   ;;  %s1531_s14 = sadd.s32 1, %s1490_s12   ;;  %s1490_s12 = sphi %s1517_s12, %s2275_s12   ;;  %s1486_s11 = sphi %s1515_s11, %s2274_s11   ;;  %s1482_s10 = sphi %s1513_s10, %s2273_s10   ;;  %s1478_s9 = sphi %s1511_s9, %s2272_s9  }
   0x5   : > { %s41_s15 = ssub.s32 %s1490_s12, %s1531_s14  ;;  %s44_s16 = sadd.s32 1, %s1486_s11 }
   0x6   : > { %p42_p0 = scmp.eq.s32.totalorder %s41_s15, 0  ;;  %p51_p1 = scmp.ne.s32.totalorder %s1486_s11, %s1482_s10 }
   0x7   : > { %p52_p2 = scmp.eq.s32.totalorder %s1490_s12, 0  ;;  %p57_p3 = scmp.ne.s32.totalorder %s1482_s10, %s1478_s9 }
   0x8   : > { %s1541_s17 = scalar_select %p42_p0, %s1486_s11, %s44_s16  }
   0x9   : > { %p53_p4 = por %p52_p2, %p51_p1  ;;  %p1545_p5 = scmp.eq.s32.totalorder %s1148_s13, 0 }
   0xa   : > { %p1150_p6 = scmp.ge.s32.totalorder %s1490_s12, 1  ;;  %p94_p7 = scmp.lt.s32.totalorder %s1490_s12, 3 }
   0xb   : > { %p1553_p8 = por %p1545_p5, %p57_p3  ;;  %s106_s23 = sshll.u32 %s2243_s0, 4  ;;  %s107_s23 = int_to_ptr.hbm [resolvable:$true] %s106_s23 }
   0xc   : > { %p1557_p9 = pnand %p1150_p6, %p94_p7  ;;  %p1282_p11 = scmp.lt.s32.totalorder %s1490_s12, 2 }
   0xd   : > { %s117_s24 = sand.u32 1, %s1486_s11   ;;  %s1264_s27 = smul.u32 96, %s1490_s12 }
   0xe   : > { %p1273_p10 = pneg %p1557_p9  ;;  %p1570_p13 = pnand %p1282_p11, %p53_p4 }
   0xf   : > { %s1265_s26 = smul.u32 96, %s117_s24  ;;  %s1492_s28 = smov [#allocation2]  }
  0x10   : > { %p1274_p12 = pnand %p1273_p10, %p1545_p5  ;;  %s127_s3 = scalar_lea.hbm %s2244_s1, %s1264_s27 }
  0x11   : > { %s121_s4 = scalar_lea.vmem [#allocation5], %s1265_s26  ;;  %s128_s6 = sshll.u32 %s127_s3, 4  ;;  %s129_s6 = int_to_ptr.hbm [resolvable:$true] %s128_s6 }
  0x12   : > { %1276 = dma.hbm_to_smem (!%p1274_p12), %s107_s23, 16, %s1492_s28, [#allocation4]  }
  0x13   : > { %s130_s5 = sshll.u32 %s121_s4, 4  ;;  %s118_s7 = scalar_lea.sflag [#allocation3], %s117_s24  ;;  %s131_s5 = int_to_ptr.vmem [resolvable:$true] %s130_s5 }
  0x14   : > { %s1422_s8 = sshra.s32 %s129_s6, 4  ;;  %p1426_p1 = pneg %p1570_p13  ;;  %s1423_s8 = int_to_ptr.hbm [resolvable:$true] %s1422_s8 }
  0x15   : > { %s1424_s9 = scalar_lea.hbm %s1423_s8, 96  ;;  %s1429_s21 = scalar_lea.hbm %s2244_s1, 192 }
  0x16   : > { %p1425_p0 = scmp.ne.s32.totalorder %s1423_s8, %s1424_s9  ;;  %p1430_p4 = scmp.lt.s32.totalorder %s1423_s8, %s2244_s1 }
  0x17   : > { %p1431_p6 = scmp.lt.s32.totalorder %s1429_s21, %s1424_s9 }
  0x18   : > { %p1427_p2 = pnand %p1426_p1, %p1425_p0 }
  0x19   : > { %p1432_p7 = por %p1431_p6, %p1430_p4 }
  0x1a   : > { %p1428_p3 = pneg %p1427_p2 }
  0x1c   : > { %p1433_p10 = pnand %p1432_p7, %p1428_p3 }
  0x1e   : > { %1436 = shalt.err (!%p1433_p10)
}
  0x1f   : > { %s1493_s24 = smov 256   ;;  %s1494_s26 = smov 16  }
  0x20   : > { %1280 = dma.hbm_to_vmem [thread:$0]  (!%p1570_p13), %s129_s6, 1536, %s131_s5, %s118_s7, %s1493_s24, %s1493_s24, %s1494_s26  }
  0x21   : > { %142 = sbr.rel (%p1557_p9) target bundleno = 536 (0x218), region = 28 }
  0x26   : > { %1469 = dma.done.wait (%p1545_p5), [#allocation4], 16  }
  0x27   : > { %1471 = vsyncadd (%p1545_p5), [#allocation4], 4294967280  ;;  %s149_s27 = sand.u32 1, %s1482_s10  }
  0x28   : > { %s1266_s28 = smul.u32 96, %s149_s27  ;;  %s150_s29 = scalar_lea.sflag [#allocation3], %s149_s27 }
  0x2a   : > { %s1595_s30 = scalar_lea.vmem [#allocation5], %s1266_s28 }
  0x2b   : > { %1473 = dma.done.wait (%p1553_p8), %s150_s29, 1536  }
  0x2c   : > { %1475 = vsyncadd (%p1553_p8), %s150_s29, 4294965760 }
  0x2d   : > { %159 = sfence }
  0x2e   : > { %v185_v0 = vlaneseq  ;;  %v207_v1 = vld [vmem:[%s1595_s30] ss:$8 sm:$0x3]  ;;  %v1495_v2 = vmov 16.0   ;;  %v1606_v7 = vld [vmem:[%s1595_s30 + $0x8] sm:$0xe0] }
  0x2f   : > { %1321 = vrcp.f32 %v1495_v2  ;;  %v1159_v3 = vmul.f32 -1.442695, %v207_v1  ;;  %v1160_v4 = vld [vmem:[%s1595_s30 + $0x1] ss:$8 sm:$0x3]  ;;  %vm302_vm0 = vcmask 1047557  }
  0x30   : > { %v1603_v5 = vand.u32 127, %v185_v0  ;;  %v1161_v6 = vmul.f32 -1.442695, %v1160_v4  ;;  %vm304_vm1 = vcmask 1044480   ;;  %v1613_v11 = vld [vmem:[%s1595_s30 + $0x18] sm:$0x1f] }
  0x31   : > { %1323 = vpow2.f32 %v1159_v3  ;;  %v1165_v9 = vld [vmem:[%s1595_s30 + $0x4] ss:$8 sm:$0x3]  ;;  %v313_v12 = vsel %vm302_vm0, %v1606_v7, -inf  ;;  %v314_v14 = vsel %vm304_vm1, %v1613_v11, -inf  ;;  %vm230_vm4 = vcmask 1040384  }
  0x32   : > { %1325 = vpow2.f32 %v1161_v6  ;;  %v1609_v8 = vadd.s32 128, %v1603_v5  ;;  %v1166_v10 = vmul.f32 -1.442695, %v1165_v9  ;;  %v1620_v15 = vld [vmem:[%s1595_s30] sm:$0xe0]  ;;  %v315_v20 = vmax.f32 %v313_v12, %v314_v14  ;;  %s1699_s18 = sld [smem:[#allocation2]] }
  0x33   : > { %v1623_v16 = vld [vmem:[%s1595_s30 + $0x10] sm:$0x1f]  ;;  %v303_v21 = vsel %vm302_vm0, %v1620_v15, -inf  ;;  %v188_v24 = vcvt.s32.f32 %v1603_v5  ;;  %v1162_v34 = vld [vmem:[%s1595_s30 + $0x2] ss:$8 sm:$0x3] }
  0x34   : > { %v189_v19 = vcvt.s32.f32 %v1609_v8  ;;  %v305_v22 = vsel %vm304_vm1, %v1623_v16, -inf  ;;  %1327 = vpow2.f32 %v1166_v10  ;;  %v316_v29 = vrot.slane %v315_v20, 4  ;;  %v1167_v45 = vld [vmem:[%s1595_s30 + $0x20] ss:$8 sm:$0x3]  ;;  %s1709_s19 = sld [smem:[#allocation2 + $0x1]] }
  0x35   : > { %v1322_v13 = vpop.eup %1321  ;;  %v306_v30 = vmax.f32 %v303_v21, %v305_v22  ;;  %v190_v32 = vadd.f32 0.5, %v188_v24  ;;  %v265_v40 = vmul.f32 1.442695, %v1162_v34  ;;  %v1168_v52 = vmul.f32 -1.442695, %v1167_v45  ;;  %s1172_s20 = sld [smem:[#allocation2 + $0x2]] }
  0x36   : > { %v193_v17 = vmul.f32 16.0, %v1322_v13  ;;  %v191_v31 = vadd.f32 0.5, %v189_v19  ;;  %vm197_vm2 = vweird.f32 %v1322_v13  ;;  %v317_v37 = vmax.f32 %v315_v20, %v316_v29  ;;  %v1163_v59 = vld [vmem:[%s1595_s30 + $0x3] ss:$8 sm:$0x3]  ;;  %s1849_s25 = sld [smem:[#allocation2 + $0x3]] }
  0x37   : > { %v1324_v18 = vpop.eup %1323  ;;  %v307_v38 = vrot.slane %v306_v30, 4  ;;  %v1169_v0 = vld [vmem:[%s1595_s30 + $0x21] ss:$8 sm:$0x3]  ;;  %v272_v12 = vmul.f32 1.442695, %v1163_v59 }
  0x38   : > { %v1326_v23 = vpop.eup %1325  ;;  %v194_v25 = vsub.f32 1.0, %v193_v17  ;;  %v1631_v26 = vadd.f32 1.0, %v1324_v18  ;;  %v318_v43 = vrot.slane %v317_v37, 2  ;;  %v1170_v14 = vmul.f32 -1.442695, %v1169_v0  ;;  %s1967_s3 = sld [smem:[#allocation2 + $0x4]] }
  0x39   : > { %v1633_v27 = vadd.f32 1.0, %v1326_v23  ;;  %v308_v44 = vmax.f32 %v306_v30, %v307_v38  ;;  %v268_v45 = vstv %s1699_s18  ;;  %vm338_vm12 = vcmask 1042432   ;;  %v1225_v23 = vld [vmem:[%s1595_s30 + $0x50] sm:$0x1f]  ;;  %s1971_s4 = sld [smem:[#allocation2 + $0x5]]  ;;  %s178_s5 = smul.u32 3, %s1148_s13 }
  0x3a   : > { %v195_v28 = vmul.f32 %v1322_v13, %v194_v25  ;;  %1329 = vrcp.f32 %v1631_v26  ;;  %v1328_v35 = vpop.eup %1327  ;;  %v319_v55 = vmax.f32 %v317_v37, %v318_v43  ;;  %vm217_vm3 = vweird.f32 %v1631_v26 }
  0x3b   : > { %1331 = vrcp.f32 %v1633_v27  ;;  %v1651_v49 = vadd.f32 1.0, %v1328_v35  ;;  %v309_v56 = vrot.slane %v308_v44, 2  ;;  %v221_v58 = vand.u32 2147483647, %v1631_v26  ;;  %p179_p5 = scmp.lt.s32.totalorder %s178_s5, 5 }
  0x3c   : > { %v196_v33 = vadd.f32 %v1322_v13, %v195_v28  ;;  %1333 = vpow2.f32 %v265_v40  ;;  %v223_v61 = vand.u32 2147483648, %v1631_v26  ;;  %v320_v63 = vrot.slane %v319_v55, 1 }
  0x3d   : > { %1335 = vrcp.f32 %v1651_v49  ;;  %v250_v1 = vand.u32 2147483647, %v1633_v27  ;;  %v252_v2 = vand.u32 2147483648, %v1633_v27  ;;  %v310_v3 = vmax.f32 %v308_v44, %v309_v56  ;;  %v1743_v56 = vld [vmem:[%s1595_s30 + $0x20] sm:$0xe0]  ;;  %s2277_s5 = smov (!%p179_p5, %s178_s5), 5 }
  0x3e   : > { %v198_v36 = vsel %vm197_vm2, %v1322_v13, %v196_v33  ;;  %vm246_vm6 = vweird.f32 %v1633_v27  ;;  %v321_v6 = vmax.f32 %v319_v55, %v320_v63  ;;  %vm1678_vm9 = vcmp.eq.f32.partialorder %v221_v58, 8.507059e+37  ;;  %v1175_v55 = vld [vmem:[%s1595_s30 + $0x24] ss:$8 sm:$0x3]  ;;  %s1263_s6 = sshll.u32 %s2277_s5, 8 }
  0x3f   : > { %v200_v39 = vmul.f32 %v198_v36, %v191_v31  ;;  %v1644_v42 = vmul.f32 %v198_v36, %v190_v32  ;;  %v311_v13 = vrot.slane %v310_v3, 1  ;;  %v224_v22 = vor.u32 1.1754944e-38, %v223_v61  ;;  %s2035_s7 = scalar_lea.vmem %s2245_s2, %s1263_s6 }
  0x40   : > { %v1642_v41 = vpop.eup %1329  ;;  %v323_v8 = vsub.f32 %v1606_v7, %v321_v6  ;;  %vm1692_vm11 = vcmp.eq.f32.partialorder %v250_v1, 8.507059e+37  ;;  %v325_v28 = vsub.f32 %v1613_v11, %v321_v6  ;;  %1337 = vpow2.f32 %v1168_v52 }
  0x41   : > { %v1647_v46 = vpop.eup %1331  ;;  %v202_v47 = vfloor.f32 %v200_v39  ;;  %v213_v48 = vmul.f32 %v1642_v41, %v1631_v26  ;;  %v201_v53 = vfloor.f32 %v1644_v42  ;;  %vm218_vm5 = vweird.f32 %v1642_v41 }
  0x42   : > { %v242_v50 = vmul.f32 %v1647_v46, %v1633_v27  ;;  %vm247_vm7 = vweird.f32 %v1647_v46  ;;  %v1334_v9 = vpop.eup %1333  ;;  %vm1674_vm8 = vmor %vm217_vm3, %vm218_vm5  ;;  %v253_v26 = vor.u32 1.1754944e-38, %v252_v2  ;;  %v328_v30 = vmul.f32 1.442695, %v323_v8 }
  0x43   : > { %v214_v51 = vsub.f32 1.0, %v213_v48  ;;  %v204_v57 = vmul.f32 16.0, %v202_v47  ;;  %v203_v4 = vmul.f32 16.0, %v201_v53  ;;  %vm1688_vm10 = vmor %vm246_vm6, %vm247_vm7  ;;  %v258_v7 = vrot.slane %v202_v47, 7 }
  0x44   : > { %v243_v54 = vsub.f32 1.0, %v242_v50  ;;  %v332_v31 = vmul.f32 1.442695, %v325_v28  ;;  %v312_v32 = vmax.f32 %v310_v3, %v311_v13  ;;  %1339 = vpow2.f32 %v1170_v14  ;;  %v1171_v14 = vld [vmem:[%s1595_s30 + $0x22] ss:$8 sm:$0x3] }
  0x45   : > { %v215_v60 = vmul.f32 %v1642_v41, %v214_v51  ;;  %v206_v10 = vsub.f32 %v189_v19, %v204_v57  ;;  %v1684_v19 = vpop.eup %1335  ;;  %v205_v29 = vsub.f32 %v188_v24, %v203_v4  ;;  %1341 = vpow2.f32 %v328_v30 }
  0x46   : > { %v244_v62 = vmul.f32 %v1647_v46, %v243_v54  ;;  %v284_v5 = vmul.f32 %v1684_v19, %v1651_v49  ;;  %1343 = vpow2.f32 %v332_v31  ;;  %v322_v24 = vsub.f32 %v1620_v15, %v312_v32  ;;  %v1338_v40 = vpop.eup %1337 }
  0x47   : > { %v216_v17 = vadd.f32 %v1642_v41, %v215_v60  ;;  %v229_v27 = vrot.slane %v206_v10, 7  ;;  %v1713_v34 = vsel %vm230_vm4, %v201_v53, %v258_v7  ;;  %v324_v35 = vsub.f32 %v1623_v16, %v312_v32 }
  0x48   : > { %v245_v21 = vadd.f32 %v1647_v46, %v244_v62  ;;  %v326_v39 = vmul.f32 1.442695, %v322_v24  ;;  %1345 = vpow2.f32 %v272_v12  ;;  %v1731_v48 = vadd.f32 1.0, %v1338_v40  ;;  %v1748_v62 = vld [vmem:[%s1595_s30 + $0x30] sm:$0x1f] }
  0x49   : > { %v220_v33 = vsel %vm1674_vm8, %v1642_v41, %v216_v17  ;;  %v1719_v37 = vsel %vm230_vm4, %v205_v29, %v229_v27  ;;  %v285_v41 = vsub.f32 1.0, %v284_v5  ;;  %v330_v15 = vmul.f32 1.442695, %v324_v35 }
  0x4a   : > { %v249_v11 = vsel %vm1688_vm10, %v1647_v46, %v245_v21  ;;  %v225_v36 = vsel %vm1678_vm9, %v224_v22, %v220_v33  ;;  %v1340_v42 = vpop.eup %1339  ;;  %1347 = vpow2.f32 %v326_v39  ;;  %v1737_v53 = vmul.f32 %v1334_v9, %v268_v45 }
  0x4b   : > { %v254_v38 = vsel %vm1692_vm11, %v253_v26, %v249_v11  ;;  %v1723_v43 = vpop.eup %1341  ;;  %v233_v16 = vadd.f32 %v1719_v37, %v225_v36  ;;  %1349 = vpow2.f32 %v330_v15  ;;  %v286_v50 = vmul.f32 %v1684_v19, %v285_v41 }
  0x4c   : > { %v261_v44 = vadd.f32 %v1713_v34, %v254_v38  ;;  %v1728_v46 = vpop.eup %1343  ;;  %v342_v47 = vrot.slane %v1723_v43, 5  ;;  %v1735_v52 = vadd.f32 1.0, %v1340_v42  ;;  %v275_v54 = vstv %s1709_s19 }
  0x4d   : > { %v343_v51 = vrot.slane %v1728_v46, 5  ;;  %vm288_vm13 = vweird.f32 %v1651_v49  ;;  %v234_v58 = vmul.f32 4.0, %v233_v16  ;;  %v292_v60 = vand.u32 2147483647, %v1651_v49 }
  0x4e   : > { %v1346_v57 = vpop.eup %1345  ;;  %v262_v59 = vmul.f32 4.0, %v261_v44  ;;  %vm289_vm14 = vweird.f32 %v1684_v19  ;;  %v294_v0 = vand.u32 2147483648, %v1651_v49  ;;  %1351 = vrcp.f32 %v1731_v48 }
  0x4f   : > { %v344_v61 = vsel %vm338_vm12, %v342_v47, %v343_v51  ;;  %v287_v3 = vadd.f32 %v1684_v19, %v286_v50  ;;  %1353 = vrcp.f32 %v1735_v52  ;;  %v1176_v6 = vmul.f32 -1.442695, %v1175_v55  ;;  %vm1767_vm15 = vmor %vm288_vm13, %vm289_vm14 }
  0x50   : > { %v1750_v63 = vpop.eup %1347  ;;  %v353_v1 = vrot.slane %v344_v61, 4  ;;  %v586_v12 = vsel %vm302_vm0, %v1743_v56, -inf  ;;  %v587_v13 = vsel %vm304_vm1, %v1748_v62, -inf  ;;  %v367_v17 = vperm.slane %v234_v58, 1 }
  0x51   : > { %v1755_v2 = vpop.eup %1349  ;;  %v339_v4 = vrot.slane %v1750_v63, 5  ;;  %v372_v18 = vperm.slane %v262_v59, 1  ;;  %v588_v20 = vmax.f32 %v586_v12, %v587_v13  ;;  %v276_v21 = vmul.f32 %v1346_v57, %v275_v54 }
  0x52   : > { %v354_v9 = vadd.f32 %v353_v1, %v344_v61  ;;  %v340_v10 = vrot.slane %v1755_v2, 5  ;;  %vm1772_vm2 = vcmp.eq.f32.partialorder %v292_v60, 8.507059e+37  ;;  %v295_v25 = vor.u32 1.1754944e-38, %v294_v0 }
  0x53   : > { %1355 = vpow2.f32 %v1176_v6  ;;  %v291_v49 = vsel %vm1767_vm15, %v1684_v19, %v287_v3  ;;  %v377_v7 = vperm.slane %v1737_v53, 1  ;;  %v589_v30 = vrot.slane %v588_v20, 4 }
  0x54   : > { %v355_v8 = vrot.slane %v354_v9, 2  ;;  %v341_v22 = vsel %vm338_vm12, %v339_v4, %v340_v10  ;;  %v1776_v28 = vpop.eup %1351  ;;  %v391_v31 = vsel %vm230_vm4, %v367_v17, %v372_v18  ;;  %vm392_vm3 = vcmask 1041408  }
  0x55   : > { %v347_v26 = vrot.slane %v341_v22, 4  ;;  %v1782_v27 = vpop.eup %1353  ;;  %v382_v11 = vperm.slane %v276_v21, 1  ;;  %v590_v5 = vmax.f32 %v588_v20, %v589_v30  ;;  %v296_v24 = vsel %vm1772_vm2, %v295_v25, %v291_v49 }
  0x56   : > { %v356_v29 = vadd.f32 %v355_v8, %v354_v9  ;;  %v366_v36 = vperm.slane %v234_v58, 0  ;;  %v371_v38 = vperm.slane %v262_v59, 0  ;;  %v394_v39 = vsel %vm392_vm3, %v391_v31, %v377_v7 }
  0x57   : > { %v348_v32 = vadd.f32 %v347_v26, %v341_v22  ;;  %v508_v40 = vmul.f32 %v1776_v28, %v1731_v48  ;;  %v531_v41 = vmul.f32 %v1782_v27, %v1735_v52  ;;  %vm397_vm5 = vcmask 1043456  }
  0x58   : > { %v357_v33 = vrot.slane %v356_v29, 1  ;;  %v376_v16 = vperm.slane %v1737_v53, 0  ;;  %v591_v44 = vrot.slane %v590_v5, 2  ;;  %v387_v45 = vperm.slane %v296_v24, 1 }
  0x59   : > { %v349_v35 = vrot.slane %v348_v32, 2  ;;  %v1356_v15 = vpop.eup %1355  ;;  %v396_v47 = vsel %vm338_vm12, %v394_v39, %v382_v11  ;;  %v390_v51 = vsel %vm230_vm4, %v366_v36, %v371_v38  ;;  %v509_v54 = vsub.f32 1.0, %v508_v40 }
  0x5a   : > { %v358_v19 = vadd.f32 %v357_v33, %v356_v29  ;;  %v532_v55 = vsub.f32 1.0, %v531_v41  ;;  %v1795_v57 = vadd.f32 1.0, %v1356_v15  ;;  %v592_v58 = vmax.f32 %v590_v5, %v591_v44  ;;  %v1173_v5 = vld [vmem:[%s1595_s30 + $0x23] ss:$8 sm:$0x3] }
  0x5b   : > { %v350_v42 = vadd.f32 %v349_v35, %v348_v32  ;;  %v381_v60 = vperm.slane %v276_v21, 0  ;;  %v393_v61 = vsel %vm392_vm3, %v390_v51, %v376_v16  ;;  %v399_v53 = vsel %vm397_vm5, %v396_v47, %v387_v45 }
  0x5c   : > { %1357 = vrcp.f32 %v358_v19  ;;  %v593_v0 = vrot.slane %v592_v58, 1  ;;  %v386_v1 = vperm.slane %v296_v24, 0  ;;  %vm512_vm6 = vweird.f32 %v1731_v48 }
  0x5d   : > { %v351_v50 = vrot.slane %v350_v42, 1  ;;  %v510_v4 = vmul.f32 %v1776_v28, %v509_v54  ;;  %v533_v6 = vmul.f32 %v1782_v27, %v532_v55  ;;  %v395_v12 = vsel %vm338_vm12, %v393_v61, %v381_v60 }
  0x5e   : > { %v594_v9 = vmax.f32 %v592_v58, %v593_v0  ;;  %vm513_vm7 = vweird.f32 %v1776_v28  ;;  %v516_v13 = vand.u32 2147483647, %v1731_v48  ;;  %vm535_vm8 = vweird.f32 %v1735_v52 }
  0x5f   : > { %v352_v59 = vadd.f32 %v351_v50, %v350_v42  ;;  %vm536_vm9 = vweird.f32 %v1782_v27  ;;  %v518_v21 = vand.u32 2147483648, %v1731_v48  ;;  %v541_v8 = vand.u32 2147483648, %v1735_v52  ;;  %vm1819_vm10 = vmor %vm512_vm6, %vm513_vm7 }
  0x60   : > { %v604_v17 = vsub.f32 %v1743_v56, %v594_v9  ;;  %v606_v18 = vsub.f32 %v1748_v62, %v594_v9  ;;  %v511_v22 = vadd.f32 %v1776_v28, %v510_v4  ;;  %v534_v56 = vadd.f32 %v1782_v27, %v533_v6  ;;  %vm1830_vm11 = vmor %vm535_vm8, %vm536_vm9 }
  0x61   : > { %1359 = vrcp.f32 %v352_v59  ;;  %v398_v49 = vsel %vm397_vm5, %v395_v12, %v386_v1  ;;  %v549_v31 = vmul.f32 1.442695, %v1171_v14  ;;  %vm517_vm13 = vcmp.eq.f32.partialorder %v516_v13, 8.507059e+37 }
  0x62   : > { %v1358_v3 = vpop.eup %1357  ;;  %1361 = vrcp.f32 %v1795_v57  ;;  %v608_v62 = vmul.f32 1.442695, %v604_v17  ;;  %v612_v25 = vmul.f32 1.442695, %v606_v18  ;;  %v519_v32 = vor.u32 1.1754944e-38, %v518_v21 }
  0x63   : > { %v362_v10 = vmul.f32 %v1358_v3, %v1723_v43  ;;  %v539_v43 = vand.u32 2147483647, %v1735_v52  ;;  %v364_v29 = vmul.f32 %v1358_v3, %v1728_v46  ;;  %v542_v33 = vor.u32 1.1754944e-38, %v541_v8 }
  0x64   : > { %1363 = vpow2.f32 %v608_v62  ;;  %v515_v52 = vsel %vm1819_vm10, %v1776_v28, %v511_v22  ;;  %v538_v11 = vsel %vm1830_vm11, %v1782_v27, %v534_v56  ;;  %v556_v19 = vmul.f32 1.442695, %v1173_v5  ;;  %v1223_v22 = vld [vmem:[%s1595_s30 + $0x40] sm:$0xe0] }
  0x65   : > { %v401_v20 = vsel %vm304_vm1, %v399_v53, %v362_v10  ;;  %1365 = vpow2.f32 %v612_v25  ;;  %vm540_vm14 = vcmp.eq.f32.partialorder %v539_v43, 8.507059e+37  ;;  %v520_v36 = vsel %vm517_vm13, %v519_v32, %v515_v52  ;;  %v1215_v52 = vld [vmem:[%s1595_s30 + $0x41] ss:$8 sm:$0x3] }
  0x66   : > { %436 = vxpose.xlu1.b32.start [1/2] (short) %v401_v20, 128  ;;  %v543_v38 = vsel %vm540_vm14, %v542_v33, %v538_v11  ;;  %1367 = vpow2.f32 %v549_v31  ;;  %v522_v15 = vadd.f32 %v520_v36, %v1719_v37  ;;  %v552_v54 = vstv %s1172_s20 }
  0x67   : > { %v1360_v26 = vpop.eup %1359  ;;  %v545_v42 = vadd.f32 %v543_v38, %v1713_v34  ;;  %1369 = vpow2.f32 %v556_v19  ;;  %vm572_vm15 = vweird.f32 %v1795_v57  ;;  %v559_v58 = vstv %s1849_s25 }
  0x68   : > { %v1834_v7 = vpop.eup %1361  ;;  %v361_v30 = vmul.f32 %v1360_v26, %v1750_v63  ;;  %v403_v63 = vsel %vm304_vm1, %v364_v29, 0.0  ;;  %v363_v35 = vmul.f32 %v1360_v26, %v1755_v2  ;;  %v1856_v50 = vmul.f32 4.0, %v522_v15 }
  0x69   : > { %v568_v24 = vmul.f32 %v1834_v7, %v1795_v57  ;;  %v1858_v51 = vmul.f32 4.0, %v545_v42  ;;  %vm573_vm2 = vweird.f32 %v1834_v7  ;;  %v578_v59 = vand.u32 2147483648, %v1795_v57  ;;  %v1178_v42 = vld [vmem:[%s1595_s30 + $0x28] sm:$0xe0] }
  0x6a   : > { %v400_v46 = vsel %vm304_vm1, %v398_v49, %v361_v30  ;;  %v1364_v39 = vpop.eup %1363  ;;  %v402_v41 = vsel %vm304_vm1, %v363_v35, 0.0  ;;  %v576_v53 = vand.u32 2147483647, %v1795_v57  ;;  %vm574_vm6 = vmor %vm572_vm15, %vm573_vm2  ;;  %v647_v3 = vperm.slane %v1856_v50, 0 }
  0x6b   : > { %404 = vxpose.xlu0.b32.start [1/2] (short) %v400_v46, 128  ;;  %v1366_v28 = vpop.eup %1365  ;;  %v569_v27 = vsub.f32 1.0, %v568_v24  ;;  %v620_v40 = vrot.slane %v1364_v39, 5  ;;  %v652_v4 = vperm.slane %v1858_v51, 0  ;;  %v579_v10 = vor.u32 1.1754944e-38, %v578_v59 }
  0x6c   : > { %v621_v2 = vrot.slane %v1366_v28, 5  ;;  %v1368_v47 = vpop.eup %1367  ;;  %vm577_vm7 = vcmp.eq.f32.partialorder %v576_v53, 8.507059e+37  ;;  %v865_v26 = vsel %vm302_vm0, %v1223_v22, -inf  ;;  %v866_v49 = vsel %vm304_vm1, %v1225_v23, -inf }
  0x6d   : > { %v570_v44 = vmul.f32 %v1834_v7, %v569_v27  ;;  %v1370_v60 = vpop.eup %1369  ;;  %v1864_v61 = vmul.f32 %v1368_v47, %v552_v54  ;;  %v671_v57 = vsel %vm230_vm4, %v647_v3, %v652_v4  ;;  %v867_v48 = vmax.f32 %v865_v26, %v866_v49  ;;  %v1213_v46 = vld [vmem:[%s1595_s30 + $0x40] ss:$8 sm:$0x3] }
  0x6e   : > { %437 = vxpose.xlu1.b32.end [2/2] (short) %v403_v63, 128  ;;  %v622_v16 = vsel %vm338_vm12, %v620_v40, %v621_v2  ;;  %v1870_v9 = vmul.f32 %v1370_v60, %v559_v58  ;;  %v1214_v5 = vmul.f32 -1.442695, %v1213_v46  ;;  %v1216_v63 = vmul.f32 -1.442695, %v1215_v52  ;;  %v1180_v2 = vld [vmem:[%s1595_s30 + $0x38] sm:$0x1f] }
  0x6f   : > { %v628_v45 = vrot.slane %v622_v16, 4  ;;  %v571_v0 = vadd.f32 %v1834_v7, %v570_v44  ;;  %v657_v14 = vperm.slane %v1864_v61, 0  ;;  %v868_v30 = vrot.slane %v867_v48, 4  ;;  %v1221_v40 = vld [vmem:[%s1595_s30 + $0x44] ss:$8 sm:$0x3] }
  0x70   : > { %v662_v20 = vperm.slane %v1870_v9, 0  ;;  %v596_v44 = vsel %vm304_vm1, %v1180_v2, -inf }
  0x71   : > { %v629_v55 = vadd.f32 %v628_v45, %v622_v16  ;;  %v575_v12 = vsel %vm574_vm6, %v1834_v7, %v571_v0  ;;  %v673_v21 = vsel %vm392_vm3, %v671_v57, %v657_v14  ;;  %v869_v32 = vmax.f32 %v867_v48, %v868_v30 }
  0x72   : > { %v1875_v18 = vsel %vm577_vm7, %v579_v10, %v575_v12  ;;  %v675_v8 = vsel %vm338_vm12, %v673_v21, %v662_v20  ;;  %v595_v16 = vsel %vm302_vm0, %v1178_v42, -inf  ;;  %v1222_v45 = vmul.f32 -1.442695, %v1221_v40  ;;  %v1917_v10 = vld [vmem:[%s1595_s30 + $0x58] sm:$0x1f] }
  0x73   : > { %405 = vxpose.xlu0.b32.end [2/2] (short) %v402_v41, 128  ;;  %v630_v1 = vrot.slane %v629_v55, 2  ;;  %v667_v43 = vperm.slane %v1875_v18, 0  ;;  %v870_v33 = vrot.slane %v869_v32, 2  ;;  %v597_v47 = vmax.f32 %v595_v16, %v596_v44 }
  0x74   : > { %v875_v57 = vsel %vm304_vm1, %v1917_v10, -inf }
  0x75   : > { %v631_v6 = vadd.f32 %v630_v1, %v629_v55  ;;  %v677_v62 = vsel %vm397_vm5, %v675_v8, %v667_v43  ;;  %v871_v11 = vmax.f32 %v869_v32, %v870_v33  ;;  %v598_v54 = vrot.slane %v597_v47, 4  ;;  %v1217_v33 = vld [vmem:[%s1595_s30 + $0x42] ss:$8 sm:$0x3] }
  0x77   : > { %v632_v13 = vrot.slane %v631_v6, 1  ;;  %v872_v24 = vrot.slane %v871_v11, 1  ;;  %v599_v55 = vmax.f32 %v597_v47, %v598_v54 }
  0x79   : > { %v633_v17 = vadd.f32 %v632_v13, %v631_v6  ;;  %v873_v35 = vmax.f32 %v871_v11, %v872_v24  ;;  %v600_v60 = vrot.slane %v599_v55, 2  ;;  %v1914_v6 = vld [vmem:[%s1595_s30 + $0x48] sm:$0xe0] }
  0x7a   : > { %v874_v14 = vsel %vm302_vm0, %v1914_v6, -inf }
  0x7b   : > { %1371 = vrcp.f32 %v633_v17  ;;  %v883_v19 = vsub.f32 %v1223_v22, %v873_v35  ;;  %v601_v1 = vmax.f32 %v599_v55, %v600_v60  ;;  %v876_v21 = vmax.f32 %v874_v14, %v875_v57 }
  0x7c   : > { %1373 = vpow2.f32 %v1214_v5 }
  0x7d   : > { %1375 = vpow2.f32 %v1216_v63  ;;  %v887_v41 = vmul.f32 1.442695, %v883_v19  ;;  %v602_v13 = vrot.slane %v601_v1, 1  ;;  %v648_v19 = vperm.slane %v1856_v50, 1 }
  0x7f   : > { %v603_v43 = vmax.f32 %v601_v1, %v602_v13 }
  0x81   : > { %v1372_v56 = vpop.eup %1371 }
  0x82   : > { %v642_v25 = vmul.f32 %v1372_v56, %v1364_v39  ;;  %v644_v7 = vmul.f32 %v1372_v56, %v1366_v28  ;;  %v1374_v36 = vpop.eup %1373  ;;  %v885_v39 = vsub.f32 %v1225_v23, %v873_v35  ;;  %v877_v56 = vrot.slane %v876_v21, 4 }
  0x83   : > { %v1376_v38 = vpop.eup %1375  ;;  %v1890_v28 = vadd.f32 1.0, %v1374_v36 }
  0x84   : > { %v679_v29 = vsel %vm304_vm1, %v677_v62, %v642_v25  ;;  %v681_v31 = vsel %vm304_vm1, %v644_v7, 0.0  ;;  %v1892_v27 = vadd.f32 1.0, %v1376_v38  ;;  %v891_v15 = vmul.f32 1.442695, %v885_v39 }
  0x85   : > { %683 = vxpose.xlu2.b32.start [1/2] (short) %v679_v29, 128  ;;  %1377 = vrcp.f32 %v1890_v28  ;;  %v605_v62 = vsub.f32 %v1178_v42, %v603_v43  ;;  %v607_v25 = vsub.f32 %v1180_v2, %v603_v43  ;;  %v878_v49 = vmax.f32 %v876_v21, %v877_v56  ;;  %v1219_v2 = vld [vmem:[%s1595_s30 + $0x43] ss:$8 sm:$0x3] }
  0x86   : > { %1379 = vrcp.f32 %v1892_v27  ;;  %vm791_vm0 = vweird.f32 %v1890_v28  ;;  %vm814_vm9 = vweird.f32 %v1892_v27  ;;  %v795_v52 = vand.u32 2147483647, %v1890_v28 }
  0x87   : > { %1381 = vpow2.f32 %v887_v41  ;;  %v610_v29 = vmul.f32 1.442695, %v605_v62  ;;  %v614_v48 = vmul.f32 1.442695, %v607_v25  ;;  %v797_v11 = vand.u32 2147483648, %v1890_v28 }
  0x88   : > { %1383 = vpow2.f32 %v891_v15  ;;  %v820_v5 = vand.u32 2147483648, %v1892_v27  ;;  %v818_v36 = vand.u32 2147483647, %v1892_v27  ;;  %vm796_vm14 = vcmp.eq.f32.partialorder %v795_v52, 8.507059e+37 }
  0x89   : > { %1385 = vpow2.f32 %v1222_v45  ;;  %v798_v15 = vor.u32 1.1754944e-38, %v797_v11  ;;  %v835_v1 = vmul.f32 1.442695, %v1219_v2 }
  0x8a   : > { %v821_v42 = vor.u32 1.1754944e-38, %v820_v5  ;;  %vm819_vm15 = vcmp.eq.f32.partialorder %v818_v36, 8.507059e+37 }
  0x8b   : > { %v1901_v58 = vpop.eup %1377 }
  0x8c   : > { %v1903_v59 = vpop.eup %1379  ;;  %v787_v3 = vmul.f32 %v1901_v58, %v1890_v28  ;;  %vm792_vm8 = vweird.f32 %v1901_v58  ;;  %v828_v28 = vmul.f32 1.442695, %v1217_v33 }
  0x8d   : > { %684 = vxpose.xlu2.b32.end [2/2] (short) %v681_v31, 128  ;;  %v1905_v0 = vpop.eup %1381  ;;  %v810_v4 = vmul.f32 %v1903_v59, %v1892_v27  ;;  %v879_v31 = vrot.slane %v878_v49, 2  ;;  %vm815_vm10 = vweird.f32 %v1903_v59  ;;  %vm1940_vm11 = vmor %vm791_vm0, %vm792_vm8  ;;  %vm468_vm8 = vcmask 105472  }
  0x8e   : > { %v1907_v53 = vpop.eup %1383  ;;  %v899_v17 = vrot.slane %v1905_v0, 5  ;;  %v788_v8 = vsub.f32 1.0, %v787_v3  ;;  %vm1946_vm13 = vmor %vm814_vm9, %vm815_vm10 }
  0x8f   : > { %v1386_v12 = vpop.eup %1385  ;;  %v900_v20 = vrot.slane %v1907_v53, 5  ;;  %v811_v22 = vsub.f32 1.0, %v810_v4  ;;  %v880_v46 = vmax.f32 %v878_v49, %v879_v31 }
  0x90   : > { %v1925_v23 = vadd.f32 1.0, %v1386_v12  ;;  %v789_v7 = vmul.f32 %v1901_v58, %v788_v8 }
  0x91   : > { %v901_v26 = vsel %vm338_vm12, %v899_v17, %v900_v20  ;;  %v812_v30 = vmul.f32 %v1903_v59, %v811_v22  ;;  %v881_v38 = vrot.slane %v880_v46, 1 }
  0x92   : > { %1387 = vrcp.f32 %v1925_v23  ;;  %v907_v32 = vrot.slane %v901_v26, 4  ;;  %v790_v63 = vadd.f32 %v1901_v58, %v789_v7  ;;  %vm851_vm2 = vweird.f32 %v1925_v23 }
  0x93   : > { %1389 = vpow2.f32 %v610_v29  ;;  %v813_v35 = vadd.f32 %v1903_v59, %v812_v30  ;;  %v882_v16 = vmax.f32 %v880_v46, %v881_v38  ;;  %v855_v30 = vand.u32 2147483647, %v1925_v23 }
  0x94   : > { %1391 = vpow2.f32 %v614_v48  ;;  %v908_v39 = vadd.f32 %v907_v32, %v901_v26  ;;  %v794_v27 = vsel %vm1940_vm11, %v1901_v58, %v790_v63 }
  0x95   : > { %v817_v45 = vsel %vm1946_vm13, %v1903_v59, %v813_v35  ;;  %v799_v3 = vsel %vm796_vm14, %v798_v15, %v794_v27  ;;  %v884_v12 = vsub.f32 %v1914_v6, %v882_v16  ;;  %1393 = vpow2.f32 %v828_v28 }
  0x96   : > { %v909_v55 = vrot.slane %v908_v39, 2  ;;  %v822_v4 = vsel %vm819_vm15, %v821_v42, %v817_v45  ;;  %v886_v13 = vsub.f32 %v1917_v10, %v882_v16  ;;  %v801_v17 = vadd.f32 %v799_v3, %v1719_v37 }
  0x97   : > { %v824_v20 = vadd.f32 %v822_v4, %v1713_v34  ;;  %1395 = vpow2.f32 %v835_v1  ;;  %v889_v43 = vmul.f32 1.442695, %v884_v12  ;;  %v831_v10 = vstv %s1967_s3 }
  0x98   : > { %v1950_v40 = vpop.eup %1387  ;;  %v910_v57 = vadd.f32 %v909_v55, %v908_v39  ;;  %v893_v22 = vmul.f32 1.442695, %v886_v13  ;;  %v1977_v25 = vmul.f32 4.0, %v801_v17  ;;  %v838_v34 = vstv %s1971_s4 }
  0x99   : > { %v1952_v41 = vpop.eup %1389  ;;  %v847_v54 = vmul.f32 %v1950_v40, %v1925_v23  ;;  %v1979_v26 = vmul.f32 4.0, %v824_v20  ;;  %vm852_vm6 = vweird.f32 %v1950_v40  ;;  %1397 = vpow2.f32 %v889_v43 }
  0x9a   : > { %v1955_v44 = vpop.eup %1391  ;;  %v623_v47 = vrot.slane %v1952_v41, 5  ;;  %v911_v56 = vrot.slane %v910_v57, 1  ;;  %v857_v37 = vand.u32 2147483648, %v1925_v23  ;;  %1399 = vpow2.f32 %v893_v22  ;;  %vm1990_vm7 = vmor %vm851_vm2, %vm852_vm6 }
  0x9b   : > { %v624_v60 = vrot.slane %v1955_v44, 5  ;;  %v848_v14 = vsub.f32 1.0, %v847_v54  ;;  %v1394_v62 = vpop.eup %1393  ;;  %v926_v33 = vperm.slane %v1977_v25, 0  ;;  %v931_v46 = vperm.slane %v1979_v26, 0 }
  0x9c   : > { %v1986_v48 = vmul.f32 %v1394_v62, %v831_v10  ;;  %v912_v31 = vadd.f32 %v911_v56, %v910_v57  ;;  %v858_v5 = vor.u32 1.1754944e-38, %v857_v37  ;;  %vm856_vm0 = vcmp.eq.f32.partialorder %v855_v30, 8.507059e+37 }
  0x9d   : > { %v625_v58 = vsel %vm338_vm12, %v623_v47, %v624_v60  ;;  %v849_v6 = vmul.f32 %v1950_v40, %v848_v14  ;;  %v1396_v29 = vpop.eup %1395  ;;  %v950_v36 = vsel %vm230_vm4, %v926_v33, %v931_v46  ;;  %v653_v39 = vperm.slane %v1858_v51, 1 }
  0x9e   : > { %v634_v59 = vrot.slane %v625_v58, 4  ;;  %v839_v11 = vmul.f32 %v1396_v29, %v838_v34  ;;  %1401 = vrcp.f32 %v912_v31  ;;  %v936_v23 = vperm.slane %v1986_v48, 0 }
  0x9f   : > { %v850_v7 = vadd.f32 %v1950_v40, %v849_v6  ;;  %v1398_v63 = vpop.eup %1397  ;;  %v672_v47 = vsel %vm230_vm4, %v648_v19, %v653_v39  ;;  %v663_v55 = vperm.slane %v1870_v9, 1  ;;  %v668_v4 = vperm.slane %v1875_v18, 1 }
  0xa0   : > { %v635_v21 = vadd.f32 %v634_v59, %v625_v58  ;;  %v1400_v35 = vpop.eup %1399  ;;  %v941_v15 = vperm.slane %v839_v11, 0  ;;  %v952_v42 = vsel %vm392_vm3, %v950_v36, %v936_v23  ;;  %v902_v2 = vrot.slane %v1398_v63, 5 }
  0xa1   : > { %v854_v24 = vsel %vm1990_vm7, %v1950_v40, %v850_v7  ;;  %v903_v16 = vrot.slane %v1400_v35, 5  ;;  %v658_v40 = vperm.slane %v1864_v61, 1  ;;  %v937_v22 = vperm.slane %v1986_v48, 1 }
  0xa2   : > { %v636_v8 = vrot.slane %v635_v21, 2  ;;  %v859_v28 = vsel %vm856_vm0, %v858_v5, %v854_v24  ;;  %v954_v54 = vsel %vm338_vm12, %v952_v42, %v941_v15  ;;  %v942_v56 = vperm.slane %v839_v11, 1 }
  0xa3   : > { %v946_v45 = vperm.slane %v859_v28, 0  ;;  %v904_v50 = vsel %vm338_vm12, %v902_v2, %v903_v16  ;;  %v674_v60 = vsel %vm392_vm3, %v672_v47, %v658_v40  ;;  %v947_v10 = vperm.slane %v859_v28, 1 }
  0xa4   : > { %v637_v49 = vadd.f32 %v636_v8, %v635_v21  ;;  %v1402_v27 = vpop.eup %1401  ;;  %v913_v61 = vrot.slane %v904_v50, 4  ;;  %v676_v58 = vsel %vm338_vm12, %v674_v60, %v663_v55  ;;  %v927_v8 = vperm.slane %v1977_v25, 1 }
  0xa5   : > { %v921_v51 = vmul.f32 %v1402_v27, %v1905_v0  ;;  %v956_v1 = vsel %vm397_vm5, %v954_v54, %v946_v45  ;;  %v678_v9 = vsel %vm397_vm5, %v676_v58, %v668_v4  ;;  %v923_v0 = vmul.f32 %v1402_v27, %v1907_v53 }
  0xa6   : > { %v638_v52 = vrot.slane %v637_v49, 1  ;;  %v914_v13 = vadd.f32 %v913_v61, %v904_v50  ;;  %v932_v53 = vperm.slane %v1979_v26, 1 }
  0xa7   : > { %v958_v12 = vsel %vm304_vm1, %v956_v1, %v921_v51  ;;  %v960_v18 = vsel %vm304_vm1, %v923_v0, 0.0 }
  0xa8   : > { %v639_v38 = vadd.f32 %v638_v52, %v637_v49  ;;  %v915_v57 = vrot.slane %v914_v13, 2  ;;  %v951_v6 = vsel %vm230_vm4, %v927_v8, %v932_v53 }
  0xaa   : > { %1403 = vrcp.f32 %v639_v38  ;;  %v916_v20 = vadd.f32 %v915_v57, %v914_v13 }
  0xb0   : > { %v1404_v3 = vpop.eup %1403 }
  0xb1   : > { %v643_v59 = vmul.f32 %v1404_v3, %v1952_v41  ;;  %v645_v17 = vmul.f32 %v1404_v3, %v1955_v44  ;;  %v917_v41 = vrot.slane %v916_v20, 1  ;;  %v953_v44 = vsel %vm392_vm3, %v951_v6, %v937_v22 }
  0xb2   : > { %v955_v49 = vsel %vm338_vm12, %v953_v44, %v942_v56 }
  0xb3   : > { %v680_v14 = vsel %vm304_vm1, %v678_v9, %v643_v59  ;;  %v682_v21 = vsel %vm304_vm1, %v645_v17, 0.0  ;;  %v918_v43 = vadd.f32 %v917_v41, %v916_v20  ;;  %v957_v25 = vsel %vm397_vm5, %v955_v49, %v947_v10 }
  0xb5   : > { %1405 = vrcp.f32 %v918_v43 }
  0xbb   : > { %v1406_v62 = vpop.eup %1405 }
  0xbc   : > { %v922_v34 = vmul.f32 %v1406_v62, %v1398_v63  ;;  %v924_v37 = vmul.f32 %v1406_v62, %v1400_v35 }
  0xbe   : > { %v959_v26 = vsel %vm304_vm1, %v957_v25, %v922_v34  ;;  %v961_v48 = vsel %vm304_vm1, %v924_v37, 0.0 }
  0xe6   : > { %962 = vxpose.xlu1.b32.start [1/2] (short) %v958_v12, 128 }
  0xeb   : > { %715 = vxpose.xlu0.b32.start [1/2] (short) %v680_v14, 128 }
  0xee   : > { %963 = vxpose.xlu1.b32.end [2/2] (short) %v960_v18, 128 }
  0xf3   : > { %716 = vxpose.xlu0.b32.end [2/2] (short) %v682_v21, 128 }
 0x105   : > { %994 = vxpose.xlu2.b32.start [1/2] (short) %v959_v26, 128 }
 0x10a   : > { %v452_v29 = vpop.trf.xlu1 }
 0x10b   : > { %485 = vst.msk [vmem:[%s2035_s7 + $0x80] sm:$0xff] %vm468_vm8, %v452_v29 }
 0x10d   : > { %995 = vxpose.xlu2.b32.end [2/2] (short) %v961_v48, 128 }
 0x10f   : > { %v420_v7 = vpop.trf.xlu0 }
 0x110   : > { %469 = vst.msk [vmem:[%s2035_s7] sm:$0xff] %vm468_vm8, %v420_v7 }
 0x112   : > { %v453_v30 = vpop.trf.xlu1 }
 0x113   : > { %486 = vst.msk [vmem:[%s2035_s7 + $0x88] sm:$0xff] %vm468_vm8, %v453_v30 }
 0x117   : > { %v421_v31 = vpop.trf.xlu0 }
 0x118   : > { %470 = vst.msk [vmem:[%s2035_s7 + $0x8] sm:$0xff] %vm468_vm8, %v421_v31 }
 0x11a   : > { %v454_v32 = vpop.trf.xlu1 }
 0x11b   : > { %487 = vst.msk [vmem:[%s2035_s7 + $0x90] sm:$0xff] %vm468_vm8, %v454_v32 }
 0x11e   : > { %v699_v46 = vpop.trf.xlu2 }
 0x11f   : > { %v422_v33 = vpop.trf.xlu0  ;;  %1181 = vst.msk [vmem:[%s2035_s7 + $0x100] sm:$0xff] %vm468_vm8, %v699_v46 }
 0x120   : > { %471 = vst.msk [vmem:[%s2035_s7 + $0x10] sm:$0xff] %vm468_vm8, %v422_v33 }
 0x122   : > { %v455_v52 = vpop.trf.xlu1 }
 0x123   : > { %488 = vst.msk [vmem:[%s2035_s7 + $0x98] sm:$0xff] %vm468_vm8, %v455_v52 }
 0x126   : > { %v700_v5 = vpop.trf.xlu2 }
 0x127   : > { %v423_v11 = vpop.trf.xlu0  ;;  %1182 = vst.msk [vmem:[%s2035_s7 + $0x108] sm:$0xff] %vm468_vm8, %v700_v5 }
 0x128   : > { %472 = vst.msk [vmem:[%s2035_s7 + $0x18] sm:$0xff] %vm468_vm8, %v423_v11 }
 0x12a   : > { %v456_v63 = vpop.trf.xlu1 }
 0x12b   : > { %489 = vst.msk [vmem:[%s2035_s7 + $0xa0] sm:$0xff] %vm468_vm8, %v456_v63 }
 0x12e   : > { %v701_v23 = vpop.trf.xlu2 }
 0x12f   : > { %v424_v24 = vpop.trf.xlu0  ;;  %1183 = vst.msk [vmem:[%s2035_s7 + $0x110] sm:$0xff] %vm468_vm8, %v701_v23 }
 0x130   : > { %473 = vst.msk [vmem:[%s2035_s7 + $0x20] sm:$0xff] %vm468_vm8, %v424_v24 }
 0x132   : > { %v457_v35 = vpop.trf.xlu1 }
 0x133   : > { %490 = vst.msk [vmem:[%s2035_s7 + $0xa8] sm:$0xff] %vm468_vm8, %v457_v35 }
 0x136   : > { %v702_v38 = vpop.trf.xlu2 }
 0x137   : > { %v425_v36 = vpop.trf.xlu0  ;;  %1184 = vst.msk [vmem:[%s2035_s7 + $0x118] sm:$0xff] %vm468_vm8, %v702_v38 }
 0x138   : > { %474 = vst.msk [vmem:[%s2035_s7 + $0x28] sm:$0xff] %vm468_vm8, %v425_v36 }
 0x13a   : > { %v458_v19 = vpop.trf.xlu1 }
 0x13b   : > { %491 = vst.msk [vmem:[%s2035_s7 + $0xb0] sm:$0xff] %vm468_vm8, %v458_v19 }
 0x13e   : > { %v703_v28 = vpop.trf.xlu2 }
 0x13f   : > { %v426_v39 = vpop.trf.xlu0  ;;  %1185 = vst.msk [vmem:[%s2035_s7 + $0x120] sm:$0xff] %vm468_vm8, %v703_v28 }
 0x140   : > { %475 = vst.msk [vmem:[%s2035_s7 + $0x30] sm:$0xff] %vm468_vm8, %v426_v39 }
 0x142   : > { %v459_v15 = vpop.trf.xlu1 }
 0x143   : > { %492 = vst.msk [vmem:[%s2035_s7 + $0xb8] sm:$0xff] %vm468_vm8, %v459_v15 }
 0x146   : > { %v704_v2 = vpop.trf.xlu2 }
 0x147   : > { %v427_v42 = vpop.trf.xlu0  ;;  %1186 = vst.msk [vmem:[%s2035_s7 + $0x128] sm:$0xff] %vm468_vm8, %v704_v2 }
 0x148   : > { %476 = vst.msk [vmem:[%s2035_s7 + $0x38] sm:$0xff] %vm468_vm8, %v427_v42 }
 0x14a   : > { %v460_v16 = vpop.trf.xlu1 }
 0x14b   : > { %493 = vst.msk [vmem:[%s2035_s7 + $0xc0] sm:$0xff] %vm468_vm8, %v460_v16 }
 0x14e   : > { %v705_v27 = vpop.trf.xlu2 }
 0x14f   : > { %v428_v40 = vpop.trf.xlu0  ;;  %1187 = vst.msk [vmem:[%s2035_s7 + $0x130] sm:$0xff] %vm468_vm8, %v705_v27 }
 0x150   : > { %477 = vst.msk [vmem:[%s2035_s7 + $0x40] sm:$0xff] %vm468_vm8, %v428_v40 }
 0x152   : > { %v461_v45 = vpop.trf.xlu1 }
 0x153   : > { %494 = vst.msk [vmem:[%s2035_s7 + $0xc8] sm:$0xff] %vm468_vm8, %v461_v45 }
 0x156   : > { %v706_v54 = vpop.trf.xlu2 }
 0x157   : > { %v429_v47 = vpop.trf.xlu0  ;;  %1188 = vst.msk [vmem:[%s2035_s7 + $0x138] sm:$0xff] %vm468_vm8, %v706_v54 }
 0x158   : > { %478 = vst.msk [vmem:[%s2035_s7 + $0x48] sm:$0xff] %vm468_vm8, %v429_v47 }
 0x15a   : > { %v462_v55 = vpop.trf.xlu1 }
 0x15b   : > { %495 = vst.msk [vmem:[%s2035_s7 + $0xd0] sm:$0xff] %vm468_vm8, %v462_v55 }
 0x15e   : > { %v707_v51 = vpop.trf.xlu2 }
 0x15f   : > { %v430_v50 = vpop.trf.xlu0  ;;  %1189 = vst.msk [vmem:[%s2035_s7 + $0x140] sm:$0xff] %vm468_vm8, %v707_v51 }
 0x160   : > { %479 = vst.msk [vmem:[%s2035_s7 + $0x50] sm:$0xff] %vm468_vm8, %v430_v50 }
 0x162   : > { %v463_v60 = vpop.trf.xlu1 }
 0x163   : > { %496 = vst.msk [vmem:[%s2035_s7 + $0xd8] sm:$0xff] %vm468_vm8, %v463_v60 }
 0x166   : > { %v708_v3 = vpop.trf.xlu2 }
 0x167   : > { %v431_v1 = vpop.trf.xlu0  ;;  %1190 = vst.msk [vmem:[%s2035_s7 + $0x148] sm:$0xff] %vm468_vm8, %v708_v3 }
 0x168   : > { %480 = vst.msk [vmem:[%s2035_s7 + $0x58] sm:$0xff] %vm468_vm8, %v431_v1 }
 0x16a   : > { %v464_v4 = vpop.trf.xlu1 }
 0x16b   : > { %497 = vst.msk [vmem:[%s2035_s7 + $0xe0] sm:$0xff] %vm468_vm8, %v464_v4 }
 0x16e   : > { %v709_v58 = vpop.trf.xlu2 }
 0x16f   : > { %v432_v61 = vpop.trf.xlu0  ;;  %1191 = vst.msk [vmem:[%s2035_s7 + $0x150] sm:$0xff] %vm468_vm8, %v709_v58 }
 0x170   : > { %481 = vst.msk [vmem:[%s2035_s7 + $0x60] sm:$0xff] %vm468_vm8, %v432_v61 }
 0x172   : > { %v465_v12 = vpop.trf.xlu1 }
 0x173   : > { %498 = vst.msk [vmem:[%s2035_s7 + $0xe8] sm:$0xff] %vm468_vm8, %v465_v12 }
 0x176   : > { %v710_v9 = vpop.trf.xlu2 }
 0x177   : > { %v433_v59 = vpop.trf.xlu0  ;;  %1192 = vst.msk [vmem:[%s2035_s7 + $0x158] sm:$0xff] %vm468_vm8, %v710_v9 }
 0x178   : > { %482 = vst.msk [vmem:[%s2035_s7 + $0x68] sm:$0xff] %vm468_vm8, %v433_v59 }
 0x17a   : > { %v466_v13 = vpop.trf.xlu1 }
 0x17b   : > { %499 = vst.msk [vmem:[%s2035_s7 + $0xf0] sm:$0xff] %vm468_vm8, %v466_v13 }
 0x17e   : > { %v711_v14 = vpop.trf.xlu2 }
 0x17f   : > { %v434_v0 = vpop.trf.xlu0  ;;  %1193 = vst.msk [vmem:[%s2035_s7 + $0x160] sm:$0xff] %vm468_vm8, %v711_v14 }
 0x180   : > { %483 = vst.msk [vmem:[%s2035_s7 + $0x70] sm:$0xff] %vm468_vm8, %v434_v0 }
 0x182   : > { %v467_v57 = vpop.trf.xlu1 }
 0x183   : > { %500 = vst.msk [vmem:[%s2035_s7 + $0xf8] sm:$0xff] %vm468_vm8, %v467_v57 }
 0x186   : > { %v712_v17 = vpop.trf.xlu2 }
 0x187   : > { %v435_v18 = vpop.trf.xlu0  ;;  %1194 = vst.msk [vmem:[%s2035_s7 + $0x168] sm:$0xff] %vm468_vm8, %v712_v17 }
 0x188   : > { %484 = vst.msk [vmem:[%s2035_s7 + $0x78] sm:$0xff] %vm468_vm8, %v435_v18 }
 0x18a   : > { %v978_v20 = vpop.trf.xlu1 }
 0x18b   : > { %1227 = vst.msk [vmem:[%s2035_s7 + $0x200] sm:$0xff] %vm468_vm8, %v978_v20 }
 0x18e   : > { %v713_v41 = vpop.trf.xlu2 }
 0x18f   : > { %v731_v21 = vpop.trf.xlu0  ;;  %1195 = vst.msk [vmem:[%s2035_s7 + $0x170] sm:$0xff] %vm468_vm8, %v713_v41 }
 0x190   : > { %1197 = vst.msk [vmem:[%s2035_s7 + $0x180] sm:$0xff] %vm468_vm8, %v731_v21 }
 0x192   : > { %v979_v43 = vpop.trf.xlu1 }
 0x193   : > { %1228 = vst.msk [vmem:[%s2035_s7 + $0x208] sm:$0xff] %vm468_vm8, %v979_v43 }
 0x196   : > { %v714_v53 = vpop.trf.xlu2 }
 0x197   : > { %v732_v8 = vpop.trf.xlu0  ;;  %1196 = vst.msk [vmem:[%s2035_s7 + $0x178] sm:$0xff] %vm468_vm8, %v714_v53 }
 0x198   : > { %1198 = vst.msk [vmem:[%s2035_s7 + $0x188] sm:$0xff] %vm468_vm8, %v732_v8 }
 0x19a   : > { %v980_v22 = vpop.trf.xlu1 }
 0x19b   : > { %1229 = vst.msk [vmem:[%s2035_s7 + $0x210] sm:$0xff] %vm468_vm8, %v980_v22 }
 0x19e   : > { %v1010_v56 = vpop.trf.xlu2 }
 0x19f   : > { %v733_v6 = vpop.trf.xlu0  ;;  %1243 = vst.msk [vmem:[%s2035_s7 + $0x280] sm:$0xff] %vm468_vm8, %v1010_v56 }
 0x1a0   : > { %1199 = vst.msk [vmem:[%s2035_s7 + $0x190] sm:$0xff] %vm468_vm8, %v733_v6 }
 0x1a2   : > { %v981_v44 = vpop.trf.xlu1 }
 0x1a3   : > { %1230 = vst.msk [vmem:[%s2035_s7 + $0x218] sm:$0xff] %vm468_vm8, %v981_v44 }
 0x1a6   : > { %v1011_v10 = vpop.trf.xlu2 }
 0x1a7   : > { %v734_v62 = vpop.trf.xlu0  ;;  %1244 = vst.msk [vmem:[%s2035_s7 + $0x288] sm:$0xff] %vm468_vm8, %v1011_v10 }
 0x1a8   : > { %1200 = vst.msk [vmem:[%s2035_s7 + $0x198] sm:$0xff] %vm468_vm8, %v734_v62 }
 0x1aa   : > { %v982_v49 = vpop.trf.xlu1 }
 0x1ab   : > { %1231 = vst.msk [vmem:[%s2035_s7 + $0x220] sm:$0xff] %vm468_vm8, %v982_v49 }
 0x1ae   : > { %v1012_v25 = vpop.trf.xlu2 }
 0x1af   : > { %v735_v34 = vpop.trf.xlu0  ;;  %1245 = vst.msk [vmem:[%s2035_s7 + $0x290] sm:$0xff] %vm468_vm8, %v1012_v25 }
 0x1b0   : > { %1201 = vst.msk [vmem:[%s2035_s7 + $0x1a0] sm:$0xff] %vm468_vm8, %v735_v34 }
 0x1b2   : > { %v983_v26 = vpop.trf.xlu1 }
 0x1b3   : > { %1232 = vst.msk [vmem:[%s2035_s7 + $0x228] sm:$0xff] %vm468_vm8, %v983_v26 }
 0x1b6   : > { %v1013_v29 = vpop.trf.xlu2 }
 0x1b7   : > { %v736_v37 = vpop.trf.xlu0  ;;  %1246 = vst.msk [vmem:[%s2035_s7 + $0x298] sm:$0xff] %vm468_vm8, %v1013_v29 }
 0x1b8   : > { %1202 = vst.msk [vmem:[%s2035_s7 + $0x1a8] sm:$0xff] %vm468_vm8, %v736_v37 }
 0x1ba   : > { %v984_v48 = vpop.trf.xlu1 }
 0x1bb   : > { %1233 = vst.msk [vmem:[%s2035_s7 + $0x230] sm:$0xff] %vm468_vm8, %v984_v48 }
 0x1be   : > { %v1014_v30 = vpop.trf.xlu2 }
 0x1bf   : > { %v737_v7 = vpop.trf.xlu0  ;;  %1247 = vst.msk [vmem:[%s2035_s7 + $0x2a0] sm:$0xff] %vm468_vm8, %v1014_v30 }
 0x1c0   : > { %1203 = vst.msk [vmem:[%s2035_s7 + $0x1b0] sm:$0xff] %vm468_vm8, %v737_v7 }
 0x1c2   : > { %v985_v31 = vpop.trf.xlu1 }
 0x1c3   : > { %1234 = vst.msk [vmem:[%s2035_s7 + $0x238] sm:$0xff] %vm468_vm8, %v985_v31 }
 0x1c6   : > { %v1015_v33 = vpop.trf.xlu2 }
 0x1c7   : > { %v738_v32 = vpop.trf.xlu0  ;;  %1248 = vst.msk [vmem:[%s2035_s7 + $0x2a8] sm:$0xff] %vm468_vm8, %v1015_v33 }
 0x1c8   : > { %1204 = vst.msk [vmem:[%s2035_s7 + $0x1b8] sm:$0xff] %vm468_vm8, %v738_v32 }
 0x1ca   : > { %v986_v46 = vpop.trf.xlu1 }
 0x1cb   : > { %1235 = vst.msk [vmem:[%s2035_s7 + $0x240] sm:$0xff] %vm468_vm8, %v986_v46 }
 0x1ce   : > { %v1016_v11 = vpop.trf.xlu2 }
 0x1cf   : > { %v739_v52 = vpop.trf.xlu0  ;;  %1249 = vst.msk [vmem:[%s2035_s7 + $0x2b0] sm:$0xff] %vm468_vm8, %v1016_v11 }
 0x1d0   : > { %1205 = vst.msk [vmem:[%s2035_s7 + $0x1c0] sm:$0xff] %vm468_vm8, %v739_v52 }
 0x1d2   : > { %v987_v5 = vpop.trf.xlu1 }
 0x1d3   : > { %1236 = vst.msk [vmem:[%s2035_s7 + $0x248] sm:$0xff] %vm468_vm8, %v987_v5 }
 0x1d6   : > { %v1017_v24 = vpop.trf.xlu2 }
 0x1d7   : > { %v740_v63 = vpop.trf.xlu0  ;;  %1250 = vst.msk [vmem:[%s2035_s7 + $0x2b8] sm:$0xff] %vm468_vm8, %v1017_v24 }
 0x1d8   : > { %1206 = vst.msk [vmem:[%s2035_s7 + $0x1c8] sm:$0xff] %vm468_vm8, %v740_v63 }
 0x1da   : > { %v988_v23 = vpop.trf.xlu1 }
 0x1db   : > { %1237 = vst.msk [vmem:[%s2035_s7 + $0x250] sm:$0xff] %vm468_vm8, %v988_v23 }
 0x1de   : > { %v1018_v36 = vpop.trf.xlu2 }
 0x1df   : > { %v741_v35 = vpop.trf.xlu0  ;;  %1251 = vst.msk [vmem:[%s2035_s7 + $0x2c0] sm:$0xff] %vm468_vm8, %v1018_v36 }
 0x1e0   : > { %1207 = vst.msk [vmem:[%s2035_s7 + $0x1d0] sm:$0xff] %vm468_vm8, %v741_v35 }
 0x1e2   : > { %v989_v38 = vpop.trf.xlu1 }
 0x1e3   : > { %1238 = vst.msk [vmem:[%s2035_s7 + $0x258] sm:$0xff] %vm468_vm8, %v989_v38 }
 0x1e6   : > { %v1019_v39 = vpop.trf.xlu2 }
 0x1e7   : > { %v742_v19 = vpop.trf.xlu0  ;;  %1252 = vst.msk [vmem:[%s2035_s7 + $0x2c8] sm:$0xff] %vm468_vm8, %v1019_v39 }
 0x1e8   : > { %1208 = vst.msk [vmem:[%s2035_s7 + $0x1d8] sm:$0xff] %vm468_vm8, %v742_v19 }
 0x1ea   : > { %v990_v28 = vpop.trf.xlu1 }
 0x1eb   : > { %1239 = vst.msk [vmem:[%s2035_s7 + $0x260] sm:$0xff] %vm468_vm8, %v990_v28 }
 0x1ee   : > { %v1020_v42 = vpop.trf.xlu2 }
 0x1ef   : > { %v743_v15 = vpop.trf.xlu0  ;;  %1253 = vst.msk [vmem:[%s2035_s7 + $0x2d0] sm:$0xff] %vm468_vm8, %v1020_v42 }
 0x1f0   : > { %1209 = vst.msk [vmem:[%s2035_s7 + $0x1e0] sm:$0xff] %vm468_vm8, %v743_v15 }
 0x1f2   : > { %v991_v2 = vpop.trf.xlu1 }
 0x1f3   : > { %1240 = vst.msk [vmem:[%s2035_s7 + $0x268] sm:$0xff] %vm468_vm8, %v991_v2 }
 0x1f6   : > { %v1021_v40 = vpop.trf.xlu2 }
 0x1f7   : > { %v744_v16 = vpop.trf.xlu0  ;;  %1254 = vst.msk [vmem:[%s2035_s7 + $0x2d8] sm:$0xff] %vm468_vm8, %v1021_v40 }
 0x1f8   : > { %1210 = vst.msk [vmem:[%s2035_s7 + $0x1e8] sm:$0xff] %vm468_vm8, %v744_v16 }
 0x1fa   : > { %v992_v27 = vpop.trf.xlu1 }
 0x1fb   : > { %1241 = vst.msk [vmem:[%s2035_s7 + $0x270] sm:$0xff] %vm468_vm8, %v992_v27 }
 0x1fe   : > { %v1022_v47 = vpop.trf.xlu2 }
 0x1ff   : > { %v745_v45 = vpop.trf.xlu0  ;;  %1255 = vst.msk [vmem:[%s2035_s7 + $0x2e0] sm:$0xff] %vm468_vm8, %v1022_v47 }
 0x200   : > { %1211 = vst.msk [vmem:[%s2035_s7 + $0x1f0] sm:$0xff] %vm468_vm8, %v745_v45 }
 0x202   : > { %v993_v54 = vpop.trf.xlu1 }
 0x203   : > { %1242 = vst.msk [vmem:[%s2035_s7 + $0x278] sm:$0xff] %vm468_vm8, %v993_v54 }
 0x206   : > { %v1023_v50 = vpop.trf.xlu2 }
 0x207   : > { %v746_v55 = vpop.trf.xlu0  ;;  %1256 = vst.msk [vmem:[%s2035_s7 + $0x2e8] sm:$0xff] %vm468_vm8, %v1023_v50 }
 0x208   : > { %1212 = vst.msk [vmem:[%s2035_s7 + $0x1f8] sm:$0xff] %vm468_vm8, %v746_v55 }
 0x20e   : > { %v1024_v51 = vpop.trf.xlu2 }
 0x20f   : > { %1257 = vst.msk [vmem:[%s2035_s7 + $0x2f0] sm:$0xff] %vm468_vm8, %v1024_v51 }
 0x216   : > { %v1025_v60 = vpop.trf.xlu2 }
 0x217   : > { %1258 = vst.msk [vmem:[%s2035_s7 + $0x2f8] sm:$0xff] %vm468_vm8, %v1025_v60 }
 0x218 PF: > { %p13_p8 = scmp.ge.s32.totalorder %s1531_s14, 4   ;;  %s2272_s9 = smov %s1482_s10 }
 0x219   : > { %s2273_s10 = smov %s1486_s11  ;;  %s2274_s11 = smov %s1541_s17 }
 0x21a   : > { %s2275_s12 = smov %s1531_s14  ;;  %15 = sbr.rel (!%p13_p8) target bundleno = 4 (0x4), region = 89 }
 0x21f   :  { %1083 = vsyncpa [#allocation3], 1 }
 0x220   :  { %1085 = vsyncpa [#allocation3 + $0x1], 1 }
 0x221   :  { %1086 = vsyncpa [#allocation4], 1 }
 0x222   :  { %1088 = vsyncpa [#allocation4 + $0x1], 1 }

</bundles_post_ra>
